<compile_context>
chip_gen: v7x
topology: tpu7x:2x2x1
jax: 0.10.0
libtpu: 0.0.40
codegen_flags: <defaults>
</compile_context>

<pallas_src>
import jax
import jax.numpy as jnp
from jax.experimental import pallas as pl
from jax.experimental.pallas import tpu as pltpu

LANE = 128  # TPU lane width; all channel dims are zero-padded to this.


# ----------------------------------------------------------------------------
# Fused forward kernel factory (architecture is static: T, K, dilations, which
# blocks have a 1x1 downsample).
# ----------------------------------------------------------------------------
def _make_fused_kernel(T, K, dilations, has_down_flags):
    n_blocks = len(dilations)

    def kernel(*refs):
        # ---- unpack refs: (x, per-block weights..., rnn/linear weights, out) ----
        idx = 0
        x_ref = refs[idx]; idx += 1
        blocks = []
        for has_down in has_down_flags:
            n = 6 if has_down else 4
            blocks.append(refs[idx:idx + n]); idx += n
        wih_ref, bih_ref, whh_ref, bhh_ref, wlin_ref, blin_ref = refs[idx:idx + 6]
        o_ref = refs[idx + 6]

        x = x_ref[...]                                             # (T, LANE) f32
        rows = jax.lax.broadcasted_iota(jnp.int32, (T, LANE), 0)   # hoisted once

        def dilated_causal_conv(inp, w_ref, b_ref, dilation):
            # im2col: K causally shifted copies concatenated on the lane axis,
            # then one (T, K*LANE) @ (K*LANE, LANE) MXU matmul.
            pad = (K - 1) * dilation
            taps = []
            for j in range(K):
                s = pad - j * dilation          # rows of causal zero padding
                if s == 0:
                    taps.append(inp)
                else:
                    shifted = pltpu.roll(inp, shift=s, axis=0)      # XLU rotate
                    taps.append(jnp.where(rows < s, 0.0, shifted))  # zero wrap
            slab = jnp.concatenate(taps, axis=-1)                   # (T, K*LANE)
            return jnp.dot(slab, w_ref[...],
                           preferred_element_type=jnp.float32) + b_ref[...]

        # ---- TemporalConvNet: all blocks back to back, VMEM/vreg resident ----
        cur = x
        for bi in range(n_blocks):
            if has_down_flags[bi]:
                w1, b1, w2, b2, wd, bd = blocks[bi]
            else:
                w1, b1, w2, b2 = blocks[bi]
            d = dilations[bi]
            # dropout = identity (eval mode)
            h1 = jnp.maximum(dilated_causal_conv(cur, w1, b1, d), 0.0)
            h2 = jnp.maximum(dilated_causal_conv(h1, w2, b2, d), 0.0)
            if has_down_flags[bi]:
                res = jnp.dot(cur, wd[...],
                              preferred_element_type=jnp.float32) + bd[...]
            else:
                res = cur
            cur = jnp.maximum(h2 + res, 0.0)

        # ---- RNNCell (single batched application; hidden = TCN output) ----
        z = (jnp.dot(x, wih_ref[...], preferred_element_type=jnp.float32)
             + bih_ref[...]
             + jnp.dot(cur, whh_ref[...], preferred_element_type=jnp.float32)
             + bhh_ref[...])
        h_new = jnp.tanh(z)

        # ---- Linear + Sigmoid ----
        y = jnp.dot(h_new, wlin_ref[...],
                    preferred_element_type=jnp.float32) + blin_ref[...]
        # TODO(synk): PyTorch casts to double (.double()) before the sigmoid; TPU
        # has no native f64, so the output stays float32.
        o_ref[...] = pl.reciprocal(1.0 + jnp.exp(-y), approx=True)

    return kernel


# ----------------------------------------------------------------------------
# Lane-padding helpers (done outside the kernel, once per call).
# ----------------------------------------------------------------------------
def _pad_last(a):
    p = LANE - a.shape[-1]
    if p == 0:
        return a
    return jnp.pad(a, [(0, 0)] * (a.ndim - 1) + [(0, p)])


def _pad_conv_weight(w):
    # (K, Cin, Cout) -> (K*LANE, LANE), zero-padded, tap-major rows (matches the
    # lane-axis concatenation order of the im2col slab in the kernel).
    K, Cin, Cout = w.shape
    wp = jnp.pad(w, ((0, 0), (0, LANE - Cin), (0, LANE - Cout)))
    return wp.reshape(K * LANE, LANE)


def _pad_matrix(w):
    Cin, Cout = w.shape
    return jnp.pad(w, ((0, LANE - Cin), (0, LANE - Cout)))


# ----------------------------------------------------------------------------
# Full forward: one pallas_call.
# ----------------------------------------------------------------------------
def cl_rnn_forward(x, params):
    # x: (1, T, input_size) — batch must be 1 (CL_RNN's .view(1, seq, -1) plumbing).
    B, T, F = x.shape
    assert B == 1, "CL_RNN's view/linear plumbing is only consistent for batch=1"
    feat = x[0]  # (T, F)

    inputs = [_pad_last(feat)]
    dilations, has_down = [], []
    K = params["tcn"][0]["w1"].shape[0]
    for blk in params["tcn"]:
        inputs += [_pad_conv_weight(blk["w1"]), _pad_last(blk["b1"]),
                   _pad_conv_weight(blk["w2"]), _pad_last(blk["b2"])]
        if blk["wd"] is not None:
            inputs += [_pad_matrix(blk["wd"]), _pad_last(blk["bd"])]
        dilations.append(blk["dilation"])
        has_down.append(blk["wd"] is not None)
    inputs += [_pad_matrix(params["w_ih"]), _pad_last(params["b_ih"]),
               _pad_matrix(params["w_hh"]), _pad_last(params["b_hh"]),
               _pad_matrix(params["w_lin"]), _pad_last(params["b_lin"])]

    kernel = _make_fused_kernel(T, K, tuple(dilations), tuple(has_down))
    out_size = params["w_lin"].shape[1]

    out = pl.pallas_call(
        kernel,
        out_shape=jax.ShapeDtypeStruct((T, LANE), jnp.float32),
        in_specs=[pl.BlockSpec(memory_space=pltpu.MemorySpace.VMEM)
                  for _ in inputs],
        out_specs=pl.BlockSpec(memory_space=pltpu.MemorySpace.VMEM),
    )(*inputs)

    return out[:, :out_size].reshape(1, T, out_size)


# ----------------------------------------------------------------------------
# Parameter init (deterministic, synthetic).
# TODO(synk): real PyTorch checkpoints store Conv1d weights as (Cout, Cin, K) and
# RNNCell/Linear weights transposed; loaders must permute into this layout.
# ----------------------------------------------------------------------------
def init_params(key, input_size, output_size, num_channels, kernel_size):
    params = {"tcn": []}
    c_in = input_size
    for i, c_out in enumerate(num_channels):
        key, k0, k1, k2, k3, k4, k5 = jax.random.split(key, 7)
        blk = {
            "w1": 0.1 * jax.random.normal(k0, (kernel_size, c_in, c_out), jnp.float32),
            "b1": 0.1 * jax.random.normal(k1, (1, c_out), jnp.float32),
            "w2": 0.1 * jax.random.normal(k2, (kernel_size, c_out, c_out), jnp.float32),
            "b2": 0.1 * jax.random.normal(k3, (1, c_out), jnp.float32),
            "dilation": 2 ** i,
            "wd": (0.1 * jax.random.normal(k4, (c_in, c_out), jnp.float32)
                   if c_in != c_out else None),
            "bd": (0.1 * jax.random.normal(k5, (1, c_out), jnp.float32)
                   if c_in != c_out else None),
        }
        params["tcn"].append(blk)
        c_in = c_out
    H = num_channels[-1]
    key, k1, k2, k3, k4, k5, k6 = jax.random.split(key, 7)
    params["w_ih"] = 0.1 * jax.random.normal(k1, (input_size, H), jnp.float32)
    params["b_ih"] = 0.1 * jax.random.normal(k2, (1, H), jnp.float32)
    params["w_hh"] = 0.1 * jax.random.normal(k3, (H, H), jnp.float32)
    params["b_hh"] = 0.1 * jax.random.normal(k4, (1, H), jnp.float32)
    params["w_lin"] = 0.1 * jax.random.normal(k5, (H, output_size), jnp.float32)
    params["b_lin"] = 0.1 * jax.random.normal(k6, (1, output_size), jnp.float32)
    return params


# ----------------------------------------------------------------------------
# Pure-JAX reference (same math, no Pallas) for a correctness spot-check.
# ----------------------------------------------------------------------------
def _ref_forward(x, params):
    feat = x[0]
    T = feat.shape[0]
    cur = feat
    for blk in params["tcn"]:
        K = blk["w1"].shape[0]
        d = blk["dilation"]
        pad = (K - 1) * d

        def conv(inp, w, b, d=d, pad=pad, K=K):
            xp = jnp.pad(inp, ((pad, 0), (0, 0)))
            acc = b
            for j in range(K):
                acc = acc + xp[j * d:j * d + T] @ w[j]
            return acc

        h1 = jnp.maximum(conv(cur, blk["w1"], blk["b1"]), 0.0)
        h2 = jnp.maximum(conv(h1, blk["w2"], blk["b2"]), 0.0)
        res = cur if blk["wd"] is None else cur @ blk["wd"] + blk["bd"]
        cur = jnp.maximum(h2 + res, 0.0)
    z = feat @ params["w_ih"] + params["b_ih"] + cur @ params["w_hh"] + params["b_hh"]
    h = jnp.tanh(z)
    y = h @ params["w_lin"] + params["b_lin"]
    return (1.0 / (1.0 + jnp.exp(-y))).reshape(1, T, -1)


if __name__ == "__main__":
    input_size = 8
    output_size = 8
    num_channels = [16, 16]   # first block gets a 1x1 downsample (8 != 16)
    kernel_size = 3
    seq_len = 16

    key = jax.random.PRNGKey(0)
    key, pkey, xkey = jax.random.split(key, 3)
    params = init_params(pkey, input_size, output_size, num_channels, kernel_size)
    x = jax.random.normal(xkey, (1, seq_len, input_size), jnp.float32)

    out = jax.block_until_ready(cl_rnn_forward(x, params))
    ref = jax.block_until_ready(_ref_forward(x, params))

    assert out.shape == (1, seq_len, output_size)
    assert bool(jnp.all(jnp.isfinite(out)))
    assert bool(jnp.all((out > 0.0) & (out < 1.0)))          # sigmoid range
    assert float(jnp.max(jnp.abs(out - ref))) < 1e-2          # matches reference
    print("KERNEL_OK")
</pallas_src>

<mosaic_0001>
module attributes {stable_mosaic.version = 11 : i64} {
  func.func @kernel(%arg0: memref<16x128xf32, #tpu.memory_space<vmem>>, %arg1: memref<384x128xf32, #tpu.memory_space<vmem>>, %arg2: memref<1x128xf32, #tpu.memory_space<vmem>>, %arg3: memref<384x128xf32, #tpu.memory_space<vmem>>, %arg4: memref<1x128xf32, #tpu.memory_space<vmem>>, %arg5: memref<128x128xf32, #tpu.memory_space<vmem>>, %arg6: memref<1x128xf32, #tpu.memory_space<vmem>>, %arg7: memref<384x128xf32, #tpu.memory_space<vmem>>, %arg8: memref<1x128xf32, #tpu.memory_space<vmem>>, %arg9: memref<384x128xf32, #tpu.memory_space<vmem>>, %arg10: memref<1x128xf32, #tpu.memory_space<vmem>>, %arg11: memref<128x128xf32, #tpu.memory_space<vmem>>, %arg12: memref<1x128xf32, #tpu.memory_space<vmem>>, %arg13: memref<128x128xf32, #tpu.memory_space<vmem>>, %arg14: memref<1x128xf32, #tpu.memory_space<vmem>>, %arg15: memref<128x128xf32, #tpu.memory_space<vmem>>, %arg16: memref<1x128xf32, #tpu.memory_space<vmem>>, %arg17: memref<16x128xf32, #tpu.memory_space<vmem>>) attributes {dimension_semantics = [], scalar_prefetch = 0 : i64, scratch_operands = 0 : i64, tpu.core_type = #tpu.core_type<tc>} {
    %c0 = arith.constant 0 : index
    %c0_0 = arith.constant 0 : index
    %0 = vector.load %arg0[%c0, %c0_0] : memref<16x128xf32, #tpu.memory_space<vmem>>, vector<16x128xf32>
    %1 = tpu.iota {dimensions = array<i32: 0>} : vector<16x128xi32>
    %c2_i32 = arith.constant 2 : i32
    %2 = tpu.dynamic_rotate %0 by %c2_i32 dim 0 : vector<16x128xf32>, i32 -> vector<16x128xf32>
    %c2_i32_1 = arith.constant 2 : i32
    %3 = vector.broadcast %c2_i32_1 : i32 to vector<16x128xi32>
    %4 = arith.cmpi slt, %1, %3 : vector<16x128xi32>
    %cst = arith.constant 0.000000e+00 : f32
    %5 = vector.broadcast %cst : f32 to vector<16x128xf32>
    %6 = arith.select %4, %5, %2 : vector<16x128xi1>, vector<16x128xf32>
    %c1_i32 = arith.constant 1 : i32
    %7 = tpu.dynamic_rotate %0 by %c1_i32 dim 0 : vector<16x128xf32>, i32 -> vector<16x128xf32>
    %c1_i32_2 = arith.constant 1 : i32
    %8 = vector.broadcast %c1_i32_2 : i32 to vector<16x128xi32>
    %9 = arith.cmpi slt, %1, %8 : vector<16x128xi32>
    %cst_3 = arith.constant 0.000000e+00 : f32
    %10 = vector.broadcast %cst_3 : f32 to vector<16x128xf32>
    %11 = arith.select %9, %10, %7 : vector<16x128xi1>, vector<16x128xf32>
    %12 = tpu.concatenate %6, %11, %0 in 1 : vector<16x128xf32>, vector<16x128xf32>, vector<16x128xf32> -> vector<16x384xf32>
    %c0_4 = arith.constant 0 : index
    %c0_5 = arith.constant 0 : index
    %13 = vector.load %arg1[%c0_4, %c0_5] : memref<384x128xf32, #tpu.memory_space<vmem>>, vector<384x128xf32>
    %cst_6 = arith.constant dense<0.000000e+00> : vector<16x128xf32>
    %14 = tpu.matmul %12, %13, %cst_6 {dimension_numbers = #tpu.dot_dimension_numbers<[1], [0], [0], [1], [0, 0, 1, 1], [], []>} : vector<16x384xf32>, vector<384x128xf32>, vector<16x128xf32> -> vector<16x128xf32>
    %c0_7 = arith.constant 0 : index
    %c0_8 = arith.constant 0 : index
    %15 = vector.load %arg2[%c0_7, %c0_8] : memref<1x128xf32, #tpu.memory_space<vmem>>, vector<1x128xf32>
    %16 = vector.broadcast %15 : vector<1x128xf32> to vector<16x128xf32>
    %17 = arith.addf %14, %16 : vector<16x128xf32>
    %cst_9 = arith.constant 0.000000e+00 : f32
    %18 = vector.broadcast %cst_9 : f32 to vector<16x128xf32>
    %19 = arith.maximumf %17, %18 : vector<16x128xf32>
    %c2_i32_10 = arith.constant 2 : i32
    %20 = tpu.dynamic_rotate %19 by %c2_i32_10 dim 0 : vector<16x128xf32>, i32 -> vector<16x128xf32>
    %c2_i32_11 = arith.constant 2 : i32
    %21 = vector.broadcast %c2_i32_11 : i32 to vector<16x128xi32>
    %22 = arith.cmpi slt, %1, %21 : vector<16x128xi32>
    %cst_12 = arith.constant 0.000000e+00 : f32
    %23 = vector.broadcast %cst_12 : f32 to vector<16x128xf32>
    %24 = arith.select %22, %23, %20 : vector<16x128xi1>, vector<16x128xf32>
    %c1_i32_13 = arith.constant 1 : i32
    %25 = tpu.dynamic_rotate %19 by %c1_i32_13 dim 0 : vector<16x128xf32>, i32 -> vector<16x128xf32>
    %c1_i32_14 = arith.constant 1 : i32
    %26 = vector.broadcast %c1_i32_14 : i32 to vector<16x128xi32>
    %27 = arith.cmpi slt, %1, %26 : vector<16x128xi32>
    %cst_15 = arith.constant 0.000000e+00 : f32
    %28 = vector.broadcast %cst_15 : f32 to vector<16x128xf32>
    %29 = arith.select %27, %28, %25 : vector<16x128xi1>, vector<16x128xf32>
    %30 = tpu.concatenate %24, %29, %19 in 1 : vector<16x128xf32>, vector<16x128xf32>, vector<16x128xf32> -> vector<16x384xf32>
    %c0_16 = arith.constant 0 : index
    %c0_17 = arith.constant 0 : index
    %31 = vector.load %arg3[%c0_16, %c0_17] : memref<384x128xf32, #tpu.memory_space<vmem>>, vector<384x128xf32>
    %cst_18 = arith.constant dense<0.000000e+00> : vector<16x128xf32>
    %32 = tpu.matmul %30, %31, %cst_18 {dimension_numbers = #tpu.dot_dimension_numbers<[1], [0], [0], [1], [0, 0, 1, 1], [], []>} : vector<16x384xf32>, vector<384x128xf32>, vector<16x128xf32> -> vector<16x128xf32>
    %c0_19 = arith.constant 0 : index
    %c0_20 = arith.constant 0 : index
    %33 = vector.load %arg4[%c0_19, %c0_20] : memref<1x128xf32, #tpu.memory_space<vmem>>, vector<1x128xf32>
    %34 = vector.broadcast %33 : vector<1x128xf32> to vector<16x128xf32>
    %35 = arith.addf %32, %34 : vector<16x128xf32>
    %cst_21 = arith.constant 0.000000e+00 : f32
    %36 = vector.broadcast %cst_21 : f32 to vector<16x128xf32>
    %37 = arith.maximumf %35, %36 : vector<16x128xf32>
    %c0_22 = arith.constant 0 : index
    %c0_23 = arith.constant 0 : index
    %38 = vector.load %arg5[%c0_22, %c0_23] : memref<128x128xf32, #tpu.memory_space<vmem>>, vector<128x128xf32>
    %cst_24 = arith.constant dense<0.000000e+00> : vector<16x128xf32>
    %39 = tpu.matmul %0, %38, %cst_24 {dimension_numbers = #tpu.dot_dimension_numbers<[1], [0], [0], [1], [0, 0, 1, 1], [], []>} : vector<16x128xf32>, vector<128x128xf32>, vector<16x128xf32> -> vector<16x128xf32>
    %c0_25 = arith.constant 0 : index
    %c0_26 = arith.constant 0 : index
    %40 = vector.load %arg6[%c0_25, %c0_26] : memref<1x128xf32, #tpu.memory_space<vmem>>, vector<1x128xf32>
    %41 = vector.broadcast %40 : vector<1x128xf32> to vector<16x128xf32>
    %42 = arith.addf %39, %41 : vector<16x128xf32>
    %43 = arith.addf %37, %42 : vector<16x128xf32>
    %cst_27 = arith.constant 0.000000e+00 : f32
    %44 = vector.broadcast %cst_27 : f32 to vector<16x128xf32>
    %45 = arith.maximumf %43, %44 : vector<16x128xf32>
    %c4_i32 = arith.constant 4 : i32
    %46 = tpu.dynamic_rotate %45 by %c4_i32 dim 0 : vector<16x128xf32>, i32 -> vector<16x128xf32>
    %c4_i32_28 = arith.constant 4 : i32
    %47 = vector.broadcast %c4_i32_28 : i32 to vector<16x128xi32>
    %48 = arith.cmpi slt, %1, %47 : vector<16x128xi32>
    %cst_29 = arith.constant 0.000000e+00 : f32
    %49 = vector.broadcast %cst_29 : f32 to vector<16x128xf32>
    %50 = arith.select %48, %49, %46 : vector<16x128xi1>, vector<16x128xf32>
    %c2_i32_30 = arith.constant 2 : i32
    %51 = tpu.dynamic_rotate %45 by %c2_i32_30 dim 0 : vector<16x128xf32>, i32 -> vector<16x128xf32>
    %c2_i32_31 = arith.constant 2 : i32
    %52 = vector.broadcast %c2_i32_31 : i32 to vector<16x128xi32>
    %53 = arith.cmpi slt, %1, %52 : vector<16x128xi32>
    %cst_32 = arith.constant 0.000000e+00 : f32
    %54 = vector.broadcast %cst_32 : f32 to vector<16x128xf32>
    %55 = arith.select %53, %54, %51 : vector<16x128xi1>, vector<16x128xf32>
    %56 = tpu.concatenate %50, %55, %45 in 1 : vector<16x128xf32>, vector<16x128xf32>, vector<16x128xf32> -> vector<16x384xf32>
    %c0_33 = arith.constant 0 : index
    %c0_34 = arith.constant 0 : index
    %57 = vector.load %arg7[%c0_33, %c0_34] : memref<384x128xf32, #tpu.memory_space<vmem>>, vector<384x128xf32>
    %cst_35 = arith.constant dense<0.000000e+00> : vector<16x128xf32>
    %58 = tpu.matmul %56, %57, %cst_35 {dimension_numbers = #tpu.dot_dimension_numbers<[1], [0], [0], [1], [0, 0, 1, 1], [], []>} : vector<16x384xf32>, vector<384x128xf32>, vector<16x128xf32> -> vector<16x128xf32>
    %c0_36 = arith.constant 0 : index
    %c0_37 = arith.constant 0 : index
    %59 = vector.load %arg8[%c0_36, %c0_37] : memref<1x128xf32, #tpu.memory_space<vmem>>, vector<1x128xf32>
    %60 = vector.broadcast %59 : vector<1x128xf32> to vector<16x128xf32>
    %61 = arith.addf %58, %60 : vector<16x128xf32>
    %cst_38 = arith.constant 0.000000e+00 : f32
    %62 = vector.broadcast %cst_38 : f32 to vector<16x128xf32>
    %63 = arith.maximumf %61, %62 : vector<16x128xf32>
    %c4_i32_39 = arith.constant 4 : i32
    %64 = tpu.dynamic_rotate %63 by %c4_i32_39 dim 0 : vector<16x128xf32>, i32 -> vector<16x128xf32>
    %c4_i32_40 = arith.constant 4 : i32
    %65 = vector.broadcast %c4_i32_40 : i32 to vector<16x128xi32>
    %66 = arith.cmpi slt, %1, %65 : vector<16x128xi32>
    %cst_41 = arith.constant 0.000000e+00 : f32
    %67 = vector.broadcast %cst_41 : f32 to vector<16x128xf32>
    %68 = arith.select %66, %67, %64 : vector<16x128xi1>, vector<16x128xf32>
    %c2_i32_42 = arith.constant 2 : i32
    %69 = tpu.dynamic_rotate %63 by %c2_i32_42 dim 0 : vector<16x128xf32>, i32 -> vector<16x128xf32>
    %c2_i32_43 = arith.constant 2 : i32
    %70 = vector.broadcast %c2_i32_43 : i32 to vector<16x128xi32>
    %71 = arith.cmpi slt, %1, %70 : vector<16x128xi32>
    %cst_44 = arith.constant 0.000000e+00 : f32
    %72 = vector.broadcast %cst_44 : f32 to vector<16x128xf32>
    %73 = arith.select %71, %72, %69 : vector<16x128xi1>, vector<16x128xf32>
    %74 = tpu.concatenate %68, %73, %63 in 1 : vector<16x128xf32>, vector<16x128xf32>, vector<16x128xf32> -> vector<16x384xf32>
    %c0_45 = arith.constant 0 : index
    %c0_46 = arith.constant 0 : index
    %75 = vector.load %arg9[%c0_45, %c0_46] : memref<384x128xf32, #tpu.memory_space<vmem>>, vector<384x128xf32>
    %cst_47 = arith.constant dense<0.000000e+00> : vector<16x128xf32>
    %76 = tpu.matmul %74, %75, %cst_47 {dimension_numbers = #tpu.dot_dimension_numbers<[1], [0], [0], [1], [0, 0, 1, 1], [], []>} : vector<16x384xf32>, vector<384x128xf32>, vector<16x128xf32> -> vector<16x128xf32>
    %c0_48 = arith.constant 0 : index
    %c0_49 = arith.constant 0 : index
    %77 = vector.load %arg10[%c0_48, %c0_49] : memref<1x128xf32, #tpu.memory_space<vmem>>, vector<1x128xf32>
    %78 = vector.broadcast %77 : vector<1x128xf32> to vector<16x128xf32>
    %79 = arith.addf %76, %78 : vector<16x128xf32>
    %cst_50 = arith.constant 0.000000e+00 : f32
    %80 = vector.broadcast %cst_50 : f32 to vector<16x128xf32>
    %81 = arith.maximumf %79, %80 : vector<16x128xf32>
    %82 = arith.addf %81, %45 : vector<16x128xf32>
    %cst_51 = arith.constant 0.000000e+00 : f32
    %83 = vector.broadcast %cst_51 : f32 to vector<16x128xf32>
    %84 = arith.maximumf %82, %83 : vector<16x128xf32>
    %c0_52 = arith.constant 0 : index
    %c0_53 = arith.constant 0 : index
    %85 = vector.load %arg11[%c0_52, %c0_53] : memref<128x128xf32, #tpu.memory_space<vmem>>, vector<128x128xf32>
    %cst_54 = arith.constant dense<0.000000e+00> : vector<16x128xf32>
    %86 = tpu.matmul %0, %85, %cst_54 {dimension_numbers = #tpu.dot_dimension_numbers<[1], [0], [0], [1], [0, 0, 1, 1], [], []>} : vector<16x128xf32>, vector<128x128xf32>, vector<16x128xf32> -> vector<16x128xf32>
    %c0_55 = arith.constant 0 : index
    %c0_56 = arith.constant 0 : index
    %87 = vector.load %arg12[%c0_55, %c0_56] : memref<1x128xf32, #tpu.memory_space<vmem>>, vector<1x128xf32>
    %88 = vector.broadcast %87 : vector<1x128xf32> to vector<16x128xf32>
    %89 = arith.addf %86, %88 : vector<16x128xf32>
    %c0_57 = arith.constant 0 : index
    %c0_58 = arith.constant 0 : index
    %90 = vector.load %arg13[%c0_57, %c0_58] : memref<128x128xf32, #tpu.memory_space<vmem>>, vector<128x128xf32>
    %cst_59 = arith.constant dense<0.000000e+00> : vector<16x128xf32>
    %91 = tpu.matmul %84, %90, %cst_59 {dimension_numbers = #tpu.dot_dimension_numbers<[1], [0], [0], [1], [0, 0, 1, 1], [], []>} : vector<16x128xf32>, vector<128x128xf32>, vector<16x128xf32> -> vector<16x128xf32>
    %92 = arith.addf %89, %91 : vector<16x128xf32>
    %c0_60 = arith.constant 0 : index
    %c0_61 = arith.constant 0 : index
    %93 = vector.load %arg14[%c0_60, %c0_61] : memref<1x128xf32, #tpu.memory_space<vmem>>, vector<1x128xf32>
    %94 = vector.broadcast %93 : vector<1x128xf32> to vector<16x128xf32>
    %95 = arith.addf %92, %94 : vector<16x128xf32>
    %96 = math.tanh %95 : vector<16x128xf32>
    %c0_62 = arith.constant 0 : index
    %c0_63 = arith.constant 0 : index
    %97 = vector.load %arg15[%c0_62, %c0_63] : memref<128x128xf32, #tpu.memory_space<vmem>>, vector<128x128xf32>
    %cst_64 = arith.constant dense<0.000000e+00> : vector<16x128xf32>
    %98 = tpu.matmul %96, %97, %cst_64 {dimension_numbers = #tpu.dot_dimension_numbers<[1], [0], [0], [1], [0, 0, 1, 1], [], []>} : vector<16x128xf32>, vector<128x128xf32>, vector<16x128xf32> -> vector<16x128xf32>
    %c0_65 = arith.constant 0 : index
    %c0_66 = arith.constant 0 : index
    %99 = vector.load %arg16[%c0_65, %c0_66] : memref<1x128xf32, #tpu.memory_space<vmem>>, vector<1x128xf32>
    %100 = vector.broadcast %99 : vector<1x128xf32> to vector<16x128xf32>
    %101 = arith.addf %98, %100 : vector<16x128xf32>
    %cst_67 = arith.constant 0.000000e+00 : f32
    %102 = vector.broadcast %cst_67 : f32 to vector<16x128xf32>
    %103 = arith.subf %102, %101 : vector<16x128xf32>
    %104 = math.exp %103 : vector<16x128xf32>
    %cst_68 = arith.constant 1.000000e+00 : f32
    %105 = vector.broadcast %cst_68 : f32 to vector<16x128xf32>
    %106 = arith.addf %105, %104 : vector<16x128xf32>
    %107 = tpu.reciprocal %106 {approx = true} : vector<16x128xf32> -> vector<16x128xf32>
    %c0_69 = arith.constant 0 : index
    %c0_70 = arith.constant 0 : index
    %108 = vector.load %arg17[%c0_69, %c0_70] : memref<16x128xf32, #tpu.memory_space<vmem>>, vector<16x128xf32>
    tpu.vector_store %arg17[%c0_69, %c0_70], %107 {strides = array<i32>} : memref<16x128xf32, #tpu.memory_space<vmem>>, vector<16x128xf32>,
    return
  }
}

</mosaic_0001>

<bundles_post_ra>
// kernel: tpu_custom_call.1
= control target key start
LH: loop header
LB: loop body
LE: loop exit
PB: predicated region body
PF: predicated region fallthrough
CT: control target
= control target key end

     0   :  { %s3158_s0 = inlined_call_operand.hbm [shape: f32[16,128], index: 0, kind: input, shape index: {}]   ;;  %s3159_s1 = inlined_call_operand.hbm [shape: f32[384,128], index: 1, kind: input, shape index: {}]   ;;  %s3160_s2 = inlined_call_operand.vmem [shape: f32[1,128], index: 2, kind: input, shape index: {}]   ;;  %s3161_s3 = inlined_call_operand.hbm [shape: f32[384,128], index: 3, kind: input, shape index: {}]   ;;  %s3162_s4 = inlined_call_operand.vmem [shape: f32[1,128], index: 4, kind: input, shape index: {}]   ;;  %s3163_s5 = inlined_call_operand.hbm [shape: f32[128,128], index: 5, kind: input, shape index: {}]   ;;  %s3164_s6 = inlined_call_operand.vmem [shape: f32[1,128], index: 6, kind: input, shape index: {}]   ;;  %s3165_s7 = inlined_call_operand.hbm [shape: f32[384,128], index: 7, kind: input, shape index: {}]   ;;  %s3166_s8 = inlined_call_operand.vmem [shape: f32[1,128], index: 8, kind: input, shape index: {}]   ;;  %s3167_s9 = inlined_call_operand.hbm [shape: f32[384,128], index: 9, kind: input, shape index: {}]   ;;  %s3168_s10 = inlined_call_operand.vmem [shape: f32[1,128], index: 10, kind: input, shape index: {}]   ;;  %s3169_s11 = inlined_call_operand.hbm [shape: f32[128,128], index: 11, kind: input, shape index: {}]   ;;  %s3170_s12 = inlined_call_operand.vmem [shape: f32[1,128], index: 12, kind: input, shape index: {}]   ;;  %s3171_s13 = inlined_call_operand.hbm [shape: f32[128,128], index: 13, kind: input, shape index: {}]   ;;  %s3172_s14 = inlined_call_operand.vmem [shape: f32[1,128], index: 14, kind: input, shape index: {}]   ;;  %s3173_s15 = inlined_call_operand.hbm [shape: f32[128,128], index: 15, kind: input, shape index: {}]   ;;  %s3174_s16 = inlined_call_operand.vmem [shape: f32[1,128], index: 16, kind: input, shape index: {}]   ;;  %s3175_s17 = inlined_call_operand.hbm [shape: f32[16,128], index: 17, kind: output, shape index: {}]  }
   0x1   :  { %3179 = sst [smem:[#allocation24_spill]] %s3158_s0 }
   0x2   :  { %3180 = sst [smem:[#allocation25_spill]] %s3159_s1 }
   0x3   :  { %3181 = sst [smem:[#allocation26_spill]] %s3175_s17 }
   0x4   :  { %22 = vsyncpa [#allocation3], 0 }
   0x5   :  { %23 = vsyncpa [#allocation6], 0 }
   0x6   :  { %24 = vsyncpa [#allocation9], 0 }
   0x7   :  { %25 = vsyncpa [#allocation12], 0 }
   0x8   :  { %26 = vsyncpa [#allocation15], 0 }
   0x9   :  { %27 = vsyncpa [#allocation4], 0  ;;  %s2751_s24 = smov [#allocation5]   ;;  %s2752_s26 = smov [#allocation8]  }
   0xa   :  { %s45_s25 = sshll.u32 %s2751_s24, 4  ;;  %s73_s27 = sshll.u32 %s2752_s26, 4  ;;  %s46_s25 = int_to_ptr.vmem [resolvable:$true] %s45_s25  ;;  %s2853_s27 = int_to_ptr.vmem [resolvable:$true] %s73_s27 }
   0xb   :  { %s3182_s0 = sld [smem:[#allocation25_spill]] }
  0x11   :  { %s2519_s30 = scalar_lea.hbm %s3182_s0, 6144 }
  0x12   :  { %p2520_p0 = scmp.ne.s32.totalorder %s3182_s0, %s2519_s30  ;;  %p2523_p1 = scmp.lt.u32.totalorder %s2519_s30, %s3182_s0 }
  0x14   :  { %p2525_p2 = pnand %p2523_p1, %p2520_p0 }
  0x16   :  { %2528 = shalt.err (!%p2525_p2)
}
  0x17   :  { %s2529_s21 = scalar_lea.vmem %s46_s25, 6144  ;;  %p2534_p4 = scmp.lt.s32.totalorder %s46_s25, %s46_s25 }
  0x18   :  { %p2530_p3 = scmp.ne.s32.totalorder %s46_s25, %s2529_s21  ;;  %p2535_p5 = scmp.lt.s32.totalorder %s2529_s21, %s2529_s21 }
  0x1a   :  { %p2536_p6 = por %p2535_p5, %p2534_p4 }
  0x1c   :  { %p2537_p7 = pnand %p2536_p6, %p2530_p3 }
  0x1e   :  { %2540 = shalt.err (!%p2537_p7)
}
  0x1f   :  { %s2753_s22 = smov 128   ;;  %s2754_s23 = smov 8  }
  0x20   :  { %51 = dma.hbm_to_vmem [thread:$0]  %s3182_s0, 6144, %s46_s25, [#allocation6], %s2753_s22, %s2753_s22, %s2754_s23  }
  0x21   :  { %s2541_s30 = scalar_lea.hbm %s3163_s5, 2048 }
  0x22   :  { %p2542_p8 = scmp.ne.s32.totalorder %s3163_s5, %s2541_s30  ;;  %p2545_p9 = scmp.lt.u32.totalorder %s2541_s30, %s3163_s5 }
  0x24   :  { %p2547_p10 = pnand %p2545_p9, %p2542_p8 }
  0x26   :  { %2550 = shalt.err (!%p2547_p10)
}
  0x27   :  { %s2551_s21 = scalar_lea.vmem %s2853_s27, 2048  ;;  %p2556_p12 = scmp.lt.s32.totalorder %s2853_s27, %s2853_s27 }
  0x28   :  { %p2552_p11 = scmp.ne.s32.totalorder %s2853_s27, %s2551_s21  ;;  %p2557_p13 = scmp.lt.s32.totalorder %s2551_s21, %s2551_s21 }
  0x2a   :  { %p2558_p0 = por %p2557_p13, %p2556_p12 }
  0x2c   :  { %p2559_p1 = pnand %p2558_p0, %p2552_p11 }
  0x2e   :  { %2562 = shalt.err (!%p2559_p1)
}
  0x2f   :  { %79 = dma.hbm_to_vmem [thread:$0]  %s3163_s5, 2048, %s2853_s27, [#allocation9], %s2753_s22, %s2753_s22, %s2754_s23  }
  0x30   :  { %s2755_s24 = smov [#allocation11]   ;;  %s2756_s28 = smov [#allocation14]  }
  0x31   :  { %s101_s26 = sshll.u32 %s2755_s24, 4  ;;  %s129_s29 = sshll.u32 %s2756_s28, 4  ;;  %s102_s26 = int_to_ptr.vmem [resolvable:$true] %s101_s26  ;;  %s2890_s29 = int_to_ptr.vmem [resolvable:$true] %s129_s29 }
  0x32   :  { %s2563_s19 = scalar_lea.hbm %s3167_s9, 6144 }
  0x33   :  { %p2564_p2 = scmp.ne.s32.totalorder %s3167_s9, %s2563_s19  ;;  %p2567_p3 = scmp.lt.u32.totalorder %s2563_s19, %s3167_s9 }
  0x35   :  { %p2569_p4 = pnand %p2567_p3, %p2564_p2 }
  0x37   :  { %2572 = shalt.err (!%p2569_p4)
}
  0x38   :  { %s2573_s5 = scalar_lea.vmem %s102_s26, 6144  ;;  %p2578_p6 = scmp.lt.s32.totalorder %s102_s26, %s102_s26 }
  0x39   :  { %p2574_p5 = scmp.ne.s32.totalorder %s102_s26, %s2573_s5  ;;  %p2579_p7 = scmp.lt.s32.totalorder %s2573_s5, %s2573_s5 }
  0x3b   :  { %p2580_p8 = por %p2579_p7, %p2578_p6 }
  0x3d   :  { %p2581_p9 = pnand %p2580_p8, %p2574_p5 }
  0x3f   :  { %2584 = shalt.err (!%p2581_p9)
}
  0x40   :  { %107 = dma.hbm_to_vmem [thread:$0]  %s3167_s9, 6144, %s102_s26, [#allocation12], %s2753_s22, %s2753_s22, %s2754_s23  }
  0x41   :  { %s2585_s17 = scalar_lea.hbm %s3171_s13, 2048 }
  0x42   :  { %p2586_p10 = scmp.ne.s32.totalorder %s3171_s13, %s2585_s17  ;;  %p2589_p11 = scmp.lt.u32.totalorder %s2585_s17, %s3171_s13 }
  0x44   :  { %p2591_p12 = pnand %p2589_p11, %p2586_p10 }
  0x46   :  { %2594 = shalt.err (!%p2591_p12)
}
  0x47   :  { %s2595_s1 = scalar_lea.vmem %s2890_s29, 2048  ;;  %p2600_p0 = scmp.lt.s32.totalorder %s2890_s29, %s2890_s29 }
  0x48   :  { %p2596_p13 = scmp.ne.s32.totalorder %s2890_s29, %s2595_s1  ;;  %p2601_p1 = scmp.lt.s32.totalorder %s2595_s1, %s2595_s1 }
  0x4a   :  { %p2602_p2 = por %p2601_p1, %p2600_p0 }
  0x4c   :  { %p2603_p3 = pnand %p2602_p2, %p2596_p13 }
  0x4e   :  { %2606 = shalt.err (!%p2603_p3)
}
  0x4f   :  { %135 = dma.hbm_to_vmem [thread:$0]  %s3171_s13, 2048, %s2890_s29, [#allocation15], %s2753_s22, %s2753_s22, %s2754_s23  }
  0x50   :  { %s2757_s20 = smov [#allocation2]   ;;  %s2758_s5 = smov [#allocation7]  }
  0x51   :  { %s33_s21 = sshll.u32 %s2757_s20, 4  ;;  %s59_s27 = sshll.u32 %s2758_s5, 4  ;;  %s34_s21 = int_to_ptr.vmem [resolvable:$true] %s33_s21  ;;  %s2927_s27 = int_to_ptr.vmem [resolvable:$true] %s59_s27 }
  0x52   :  { %s3183_s24 = sld [smem:[#allocation24_spill]] }
  0x58   :  { %s2607_s17 = scalar_lea.hbm %s3183_s24, 256 }
  0x59   :  { %p2608_p4 = scmp.ne.s32.totalorder %s3183_s24, %s2607_s17  ;;  %p2611_p5 = scmp.lt.u32.totalorder %s2607_s17, %s3183_s24 }
  0x5b   :  { %p2613_p6 = pnand %p2611_p5, %p2608_p4 }
  0x5d   :  { %2616 = shalt.err (!%p2613_p6)
}
  0x5e   :  { %s2617_s13 = scalar_lea.vmem %s34_s21, 256  ;;  %p2622_p8 = scmp.lt.s32.totalorder %s34_s21, %s34_s21 }
  0x5f   :  { %p2618_p7 = scmp.ne.s32.totalorder %s34_s21, %s2617_s13  ;;  %p2623_p9 = scmp.lt.s32.totalorder %s2617_s13, %s2617_s13 }
  0x61   :  { %p2624_p10 = por %p2623_p9, %p2622_p8 }
  0x63   :  { %p2625_p11 = pnand %p2624_p10, %p2618_p7 }
  0x65   :  { %2628 = shalt.err (!%p2625_p11)
}
  0x66   :  { %39 = dma.hbm_to_vmem [thread:$0]  %s3183_s24, 256, %s34_s21, [#allocation3], %s2753_s22, %s2753_s22, %s2754_s23  }
  0x67   :  { %s2629_s20 = scalar_lea.hbm %s3161_s3, 6144 }
  0x68   :  { %p2630_p12 = scmp.ne.s32.totalorder %s3161_s3, %s2629_s20  ;;  %p2633_p13 = scmp.lt.u32.totalorder %s2629_s20, %s3161_s3 }
  0x6a   :  { %p2635_p0 = pnand %p2633_p13, %p2630_p12 }
  0x6c   :  { %2638 = shalt.err (!%p2635_p0)
}
  0x6d   :  { %s2639_s28 = scalar_lea.vmem %s2927_s27, 6144  ;;  %p2644_p2 = scmp.lt.s32.totalorder %s2927_s27, %s2927_s27 }
  0x6e   :  { %p2640_p1 = scmp.ne.s32.totalorder %s2927_s27, %s2639_s28  ;;  %p2645_p3 = scmp.lt.s32.totalorder %s2639_s28, %s2639_s28 }
  0x70   :  { %p2646_p4 = por %p2645_p3, %p2644_p2 }
  0x72   :  { %p2647_p5 = pnand %p2646_p4, %p2640_p1 }
  0x74   :  { %2650 = shalt.err (!%p2647_p5)
}
  0x75   :  { %65 = dma.hbm_to_vmem [thread:$0]  %s3161_s3, 6144, %s2927_s27, [#allocation6], %s2753_s22, %s2753_s22, %s2754_s23  }
  0x76   :  { %s2759_s30 = smov [#allocation10]   ;;  %s2760_s19 = smov [#allocation13]  }
  0x77   :  { %s87_s18 = sshll.u32 %s2759_s30, 4  ;;  %s115_s13 = sshll.u32 %s2760_s19, 4  ;;  %s88_s18 = int_to_ptr.vmem [resolvable:$true] %s87_s18  ;;  %s2964_s13 = int_to_ptr.vmem [resolvable:$true] %s115_s13 }
  0x78   :  { %s2651_s9 = scalar_lea.hbm %s3165_s7, 6144 }
  0x79   :  { %p2652_p6 = scmp.ne.s32.totalorder %s3165_s7, %s2651_s9  ;;  %p2655_p7 = scmp.lt.u32.totalorder %s2651_s9, %s3165_s7 }
  0x7b   :  { %p2657_p8 = pnand %p2655_p7, %p2652_p6 }
  0x7d   :  { %2660 = shalt.err (!%p2657_p8)
}
  0x7e   :  { %s2661_s3 = scalar_lea.vmem %s88_s18, 6144  ;;  %p2666_p10 = scmp.lt.s32.totalorder %s88_s18, %s88_s18 }
  0x7f   :  { %p2662_p9 = scmp.ne.s32.totalorder %s88_s18, %s2661_s3  ;;  %p2667_p11 = scmp.lt.s32.totalorder %s2661_s3, %s2661_s3 }
  0x81   :  { %p2668_p12 = por %p2667_p11, %p2666_p10 }
  0x83   :  { %p2669_p13 = pnand %p2668_p12, %p2662_p9 }
  0x85   :  { %2672 = shalt.err (!%p2669_p13)
}
  0x86   :  { %93 = dma.hbm_to_vmem [thread:$0]  %s3165_s7, 6144, %s88_s18, [#allocation9], %s2753_s22, %s2753_s22, %s2754_s23  }
  0x87   :  { %s2673_s21 = scalar_lea.hbm %s3169_s11, 2048 }
  0x88   :  { %p2674_p0 = scmp.ne.s32.totalorder %s3169_s11, %s2673_s21  ;;  %p2677_p1 = scmp.lt.u32.totalorder %s2673_s21, %s3169_s11 }
  0x8a   :  { %p2679_p2 = pnand %p2677_p1, %p2674_p0 }
  0x8c   :  { %2682 = shalt.err (!%p2679_p2)
}
  0x8d   :  { %s2683_s1 = scalar_lea.vmem %s2964_s13, 2048  ;;  %p2688_p4 = scmp.lt.s32.totalorder %s2964_s13, %s2964_s13 }
  0x8e   :  { %p2684_p3 = scmp.ne.s32.totalorder %s2964_s13, %s2683_s1  ;;  %p2689_p5 = scmp.lt.s32.totalorder %s2683_s1, %s2683_s1 }
  0x90   :  { %p2690_p6 = por %p2689_p5, %p2688_p4 }
  0x92   :  { %p2691_p7 = pnand %p2690_p6, %p2684_p3 }
  0x94   :  { %2694 = shalt.err (!%p2691_p7)
}
  0x95   :  { %121 = dma.hbm_to_vmem [thread:$0]  %s3169_s11, 2048, %s2964_s13, [#allocation12], %s2753_s22, %s2753_s22, %s2754_s23  }
  0x96   :  { %s2761_s9 = smov [#allocation16]   ;;  %s2695_s25 = scalar_lea.hbm %s3173_s15, 2048 }
  0x97   :  { %s143_s26 = sshll.u32 %s2761_s9, 4  ;;  %p2696_p8 = scmp.ne.s32.totalorder %s3173_s15, %s2695_s25  ;;  %s144_s26 = int_to_ptr.vmem [resolvable:$true] %s143_s26 }
  0x98   :  { %p2699_p9 = scmp.lt.u32.totalorder %s2695_s25, %s3173_s15 }
  0x9a   :  { %p2701_p10 = pnand %p2699_p9, %p2696_p8 }
  0x9c   :  { %2704 = shalt.err (!%p2701_p10)
}
  0x9d   :  { %s2705_s28 = scalar_lea.vmem %s144_s26, 2048  ;;  %p2710_p12 = scmp.lt.s32.totalorder %s144_s26, %s144_s26 }
  0x9e   :  { %p2706_p11 = scmp.ne.s32.totalorder %s144_s26, %s2705_s28  ;;  %p2711_p13 = scmp.lt.s32.totalorder %s2705_s28, %s2705_s28 }
  0xa0   :  { %p2712_p0 = por %p2711_p13, %p2710_p12 }
  0xa2   :  { %p2713_p1 = pnand %p2712_p0, %p2706_p11 }
  0xa4   :  { %2716 = shalt.err (!%p2713_p1)
}
  0xa5   :  { %149 = dma.hbm_to_vmem [thread:$0]  %s3173_s15, 2048, %s144_s26, [#allocation15], %s2753_s22, %s2753_s22, %s2754_s23  }
  0xa6   :  { %2739 = dma.done.wait [#allocation3], 256  }
  0xa7   :  { %2740 = vsyncadd [#allocation3], 4294967040 }
  0xa8   :  { %2741 = dma.done.wait [#allocation6], 12288  }
  0xa9   :  { %2742 = vsyncadd [#allocation6], 4294955008 }
  0xaa   :  { %2743 = dma.done.wait [#allocation9], 8192  }
  0xab   :  { %2744 = vsyncadd [#allocation9], 4294959104 }
  0xac   :  { %2745 = dma.done.wait [#allocation12], 8192  }
  0xad   :  { %2746 = vsyncadd [#allocation12], 4294959104 }
  0xae   :  { %2747 = dma.done.wait [#allocation15], 4096  }
  0xaf   :  { %2748 = vsyncadd [#allocation15], 4294963200  ;;  %v216_v0 = vld [vmem:[#allocation5 + $0x80] sm:$0xff]  ;;  %v217_v1 = vld [vmem:[#allocation5 + $0x88] sm:$0xff]  ;;  %v181_v24 = vlaneseq }
  0xb0   :  { %v200_v2 = vld [vmem:[#allocation5] sm:$0xff]  ;;  %v2105_v3 = vpack.c.bf16 %v217_v1, %v216_v0  ;;  %v201_v4 = vld [vmem:[#allocation5 + $0x8] sm:$0xff]  ;;  %v218_v5 = vld [vmem:[#allocation5 + $0x90] sm:$0xff] }
  0xb1   :  { %v219_v6 = vld [vmem:[#allocation5 + $0x98] sm:$0xff]  ;;  %v2107_v7 = vpack.c.bf16 %v201_v4, %v200_v2  ;;  %v232_v9 = vld [vmem:[#allocation5 + $0x100] sm:$0xff]  ;;  %v233_v10 = vld [vmem:[#allocation5 + $0x108] sm:$0xff]  ;;  %v3016_v35 = vshrl.u32 %v181_v24, 7 }
  0xb2   :  { %v2109_v8 = vpack.c.bf16 %v219_v6, %v218_v5  ;;  %v202_v11 = vld [vmem:[#allocation5 + $0x10] sm:$0xff]  ;;  %2106 = vmatprep.subr.bf16.mxu0 %v2105_v3  ;;  %v2137_v12 = vpack.c.bf16 %v233_v10, %v232_v9  ;;  %v203_v13 = vld [vmem:[#allocation5 + $0x18] sm:$0xff]  ;;  %v220_v14 = vld [vmem:[#allocation5 + $0xa0] sm:$0xff] }
  0xb3   :  { %v221_v15 = vld [vmem:[#allocation5 + $0xa8] sm:$0xff]  ;;  %2108 = vmatpush3.bf16.msra.mxu0 %v2107_v7  ;;  %v2111_v16 = vpack.c.bf16 %v203_v13, %v202_v11  ;;  %v234_v17 = vld [vmem:[#allocation5 + $0x110] sm:$0xff]  ;;  %v235_v18 = vld [vmem:[#allocation5 + $0x118] sm:$0xff]  ;;  %vm194_vm0 = vcmp.lt.s32.totalorder %v3016_v35, 1  ;;  %vm186_vm2 = vcmp.lt.s32.totalorder %v3016_v35, 2  ;;  %vm730_vm4 = vcmp.lt.s32.totalorder %v3016_v35, 4 }
  0xb4   :  { %2110 = vmatprep.subr.bf16.mxu0 %v2109_v8  ;;  %2138 = vmatprep.subr.bf16.mxu1 %v2137_v12  ;;  %v2113_v19 = vpack.c.bf16 %v221_v15, %v220_v14  ;;  %v2141_v20 = vpack.c.bf16 %v235_v18, %v234_v17  ;;  %v204_v21 = vld [vmem:[#allocation5 + $0x20] sm:$0xff]  ;;  %v205_v22 = vld [vmem:[#allocation5 + $0x28] sm:$0xff]  ;;  %v222_v23 = vld [vmem:[#allocation5 + $0xb0] sm:$0xff] }
  0xb5   :  { %2140 = vmatpush3.bf16.msra.mxu1 %v2137_v12  ;;  %v223_v25 = vld [vmem:[#allocation5 + $0xb8] sm:$0xff]  ;;  %v236_v26 = vld [vmem:[#allocation5 + $0x120] sm:$0xff]  ;;  %v237_v27 = vld [vmem:[#allocation5 + $0x128] sm:$0xff]  ;;  %v2115_v29 = vpack.c.bf16 %v205_v22, %v204_v21 }
  0xb6   :  { %2142 = vmatprep.subr.bf16.mxu1 %v2141_v20  ;;  %v2145_v28 = vpack.c.bf16 %v237_v27, %v236_v26  ;;  %v238_v30 = vld [vmem:[#allocation5 + $0x130] sm:$0xff]  ;;  %v239_v31 = vld [vmem:[#allocation5 + $0x138] sm:$0xff]  ;;  %v2117_v32 = vpack.c.bf16 %v223_v25, %v222_v23  ;;  %v224_v36 = vld [vmem:[#allocation5 + $0xc0] sm:$0xff] }
  0xb7   :  { %2112 = vmatpush3.bf16.msra.mxu0 %v2111_v16  ;;  %v206_v33 = vld [vmem:[#allocation5 + $0x30] sm:$0xff]  ;;  %v207_v34 = vld [vmem:[#allocation5 + $0x38] sm:$0xff]  ;;  %v225_v37 = vld [vmem:[#allocation5 + $0xc8] sm:$0xff]  ;;  %v2149_v38 = vpack.c.bf16 %v239_v31, %v238_v30 }
  0xb8   :  { %2114 = vmatprep.subr.bf16.mxu0 %v2113_v19  ;;  %v2119_v39 = vpack.c.bf16 %v207_v34, %v206_v33  ;;  %v240_v40 = vld [vmem:[#allocation5 + $0x140] sm:$0xff]  ;;  %v241_v41 = vld [vmem:[#allocation5 + $0x148] sm:$0xff]  ;;  %v2121_v42 = vpack.c.bf16 %v225_v37, %v224_v36  ;;  %v226_v45 = vld [vmem:[#allocation5 + $0xd0] sm:$0xff] }
  0xb9   :  { %2144 = vmatpush3.bf16.msra.mxu1 %v2141_v20  ;;  %v208_v43 = vld [vmem:[#allocation5 + $0x40] sm:$0xff]  ;;  %v209_v44 = vld [vmem:[#allocation5 + $0x48] sm:$0xff]  ;;  %v227_v46 = vld [vmem:[#allocation5 + $0xd8] sm:$0xff]  ;;  %v2153_v47 = vpack.c.bf16 %v241_v41, %v240_v40 }
  0xba   :  { %2146 = vmatprep.subr.bf16.mxu1 %v2145_v28  ;;  %v3019_v48 = vld [vmem:[#allocation2] sm:$0xff]  ;;  %v3021_v49 = vld [vmem:[#allocation2 + $0x8] sm:$0xff]  ;;  %v2123_v50 = vpack.c.bf16 %v209_v44, %v208_v43  ;;  %vm3027_vm1 = vmneg %vm194_vm0  ;;  %v2125_v56 = vpack.c.bf16 %v227_v46, %v226_v45 }
  0xbb   :  { %2116 = vmatpush3.bf16.msra.mxu0 %v2115_v29  ;;  %v242_v51 = vld [vmem:[#allocation5 + $0x150] sm:$0xff]  ;;  %v243_v52 = vld [vmem:[#allocation5 + $0x158] sm:$0xff]  ;;  %v192_v53 = vrot.slane %v3019_v48, 7  ;;  %v193_v54 = vrot.slane %v3021_v49, 7  ;;  %1857 = vmatprep.mubr.f32.mxu1 %v3019_v48  ;;  %v228_v59 = vld [vmem:[#allocation5 + $0xe0] sm:$0xff]  ;;  %v184_v18 = vrot.slane %v3019_v48, 6 }
  0xbc   :  { %2118 = vmatprep.subr.bf16.mxu0 %v2117_v32  ;;  %v210_v57 = vld [vmem:[#allocation5 + $0x50] sm:$0xff]  ;;  %v211_v58 = vld [vmem:[#allocation5 + $0x58] sm:$0xff]  ;;  %v229_v60 = vld [vmem:[#allocation5 + $0xe8] sm:$0xff]  ;;  %v2157_v62 = vpack.c.bf16 %v243_v52, %v242_v51  ;;  %v185_v19 = vrot.slane %v3021_v49, 6 }
  0xbd   :  { %2148 = vmatpush3.bf16.msra.mxu1 %v2145_v28  ;;  %v196_v61 = vsel %vm194_vm0, %v193_v54, %v192_v53  ;;  %v2127_v63 = vpack.c.bf16 %v211_v58, %v210_v57  ;;  %v244_v0 = vld [vmem:[#allocation5 + $0x160] sm:$0xff]  ;;  %v245_v1 = vld [vmem:[#allocation5 + $0x168] sm:$0xff]  ;;  %v2129_v2 = vpack.c.bf16 %v229_v60, %v228_v59  ;;  %v230_v5 = vld [vmem:[#allocation5 + $0xf0] sm:$0xff]  ;;  %v195_v33 = vsel %vm194_vm0, %v192_v53, %v193_v54 }
  0xbe   :  { %2150 = vmatprep.subr.bf16.mxu1 %v2149_v38  ;;  %1507 = vmatprep.mubr.msk.f32.mxu0 %vm3027_vm1, %v196_v61  ;;  %v212_v3 = vld [vmem:[#allocation5 + $0x60] sm:$0xff]  ;;  %v213_v4 = vld [vmem:[#allocation5 + $0x68] sm:$0xff]  ;;  %v231_v6 = vld [vmem:[#allocation5 + $0xf8] sm:$0xff]  ;;  %v2161_v7 = vpack.c.bf16 %v245_v1, %v244_v0  ;;  %v188_v28 = vsel %vm186_vm2, %v185_v19, %v184_v18  ;;  %v187_v41 = vsel %vm186_vm2, %v184_v18, %v185_v19 }
  0xbf   :  { %2120 = vmatpush3.bf16.msra.mxu0 %v2119_v39  ;;  %v2131_v8 = vpack.c.bf16 %v213_v4, %v212_v3  ;;  %v246_v9 = vld [vmem:[#allocation5 + $0x170] sm:$0xff]  ;;  %v247_v10 = vld [vmem:[#allocation5 + $0x178] sm:$0xff]  ;;  %v2133_v11 = vpack.c.bf16 %v231_v6, %v230_v5  ;;  %v435_v14 = vld [vmem:[#allocation7 + $0x80] sm:$0xff] }
  0xc0   :  { %2122 = vmatprep.subr.bf16.mxu0 %v2121_v42  ;;  %v214_v12 = vld [vmem:[#allocation5 + $0x70] sm:$0xff]  ;;  %v215_v13 = vld [vmem:[#allocation5 + $0x78] sm:$0xff]  ;;  %v436_v15 = vld [vmem:[#allocation7 + $0x88] sm:$0xff]  ;;  %v2165_v16 = vpack.c.bf16 %v247_v10, %v246_v9 }
  0xc1   :  { %2152 = vmatpush3.bf16.msra.mxu1 %v2149_v38  ;;  %v2135_v17 = vpack.c.bf16 %v215_v13, %v214_v12  ;;  %v451_v20 = vld [vmem:[#allocation7 + $0x100] sm:$0xff]  ;;  %v452_v21 = vld [vmem:[#allocation7 + $0x108] sm:$0xff]  ;;  %v2169_v22 = vpack.c.bf16 %v436_v15, %v435_v14  ;;  %v437_v25 = vld [vmem:[#allocation7 + $0x90] sm:$0xff] }
  0xc2   :  { %2154 = vmatprep.subr.bf16.mxu1 %v2153_v47  ;;  %v419_v23 = vld [vmem:[#allocation7] sm:$0xff]  ;;  %v420_v24 = vld [vmem:[#allocation7 + $0x8] sm:$0xff]  ;;  %v438_v26 = vld [vmem:[#allocation7 + $0x98] sm:$0xff]  ;;  %v2201_v27 = vpack.c.bf16 %v452_v21, %v451_v20 }
  0xc3   :  { %2124 = vmatpush3.bf16.msra.mxu0 %v2123_v50  ;;  %vm3047_vm3 = vmneg %vm186_vm2  ;;  %v2171_v30 = vpack.c.bf16 %v420_v24, %v419_v23  ;;  %v453_v31 = vld [vmem:[#allocation7 + $0x110] sm:$0xff]  ;;  %v454_v32 = vld [vmem:[#allocation7 + $0x118] sm:$0xff]  ;;  %v2173_v34 = vpack.c.bf16 %v438_v26, %v437_v25 }
  0xc4   :  { %2126 = vmatprep.subr.bf16.mxu0 %v2125_v56  ;;  %v421_v36 = vld [vmem:[#allocation7 + $0x10] sm:$0xff]  ;;  %v422_v37 = vld [vmem:[#allocation7 + $0x18] sm:$0xff]  ;;  %v439_v38 = vld [vmem:[#allocation7 + $0xa0] sm:$0xff]  ;;  %v2205_v40 = vpack.c.bf16 %v454_v32, %v453_v31 }
  0xc5   :  { %2156 = vmatpush3.bf16.msra.mxu1 %v2153_v47  ;;  %v440_v39 = vld [vmem:[#allocation7 + $0xa8] sm:$0xff]  ;;  %v2175_v42 = vpack.c.bf16 %v422_v37, %v421_v36  ;;  %v455_v43 = vld [vmem:[#allocation7 + $0x120] sm:$0xff]  ;;  %v441_v50 = vld [vmem:[#allocation7 + $0xb0] sm:$0xff] }
  0xc6   :  { %2158 = vmatprep.subr.bf16.mxu1 %v2157_v62  ;;  %v456_v44 = vld [vmem:[#allocation7 + $0x128] sm:$0xff]  ;;  %v2177_v45 = vpack.c.bf16 %v440_v39, %v439_v38  ;;  %v423_v46 = vld [vmem:[#allocation7 + $0x20] sm:$0xff]  ;;  %v442_v51 = vld [vmem:[#allocation7 + $0xb8] sm:$0xff] }
  0xc7   :  { %2128 = vmatpush3.bf16.msra.mxu0 %v2127_v63  ;;  %v424_v47 = vld [vmem:[#allocation7 + $0x28] sm:$0xff]  ;;  %v2209_v52 = vpack.c.bf16 %v456_v44, %v455_v43  ;;  %v457_v54 = vld [vmem:[#allocation7 + $0x130] sm:$0xff]  ;;  %v458_v56 = vld [vmem:[#allocation7 + $0x138] sm:$0xff]  ;;  %v2181_v57 = vpack.c.bf16 %v442_v51, %v441_v50 }
  0xc8   :  { %2130 = vmatprep.subr.bf16.mxu0 %v2129_v2  ;;  %v2179_v53 = vpack.c.bf16 %v424_v47, %v423_v46  ;;  %v425_v58 = vld [vmem:[#allocation7 + $0x30] sm:$0xff]  ;;  %v426_v59 = vld [vmem:[#allocation7 + $0x38] sm:$0xff]  ;;  %v2213_v60 = vpack.c.bf16 %v458_v56, %v457_v54  ;;  %v460_v63 = vld [vmem:[#allocation7 + $0x148] sm:$0xff] }
  0xc9   :  { %2160 = vmatpush3.bf16.msra.mxu1 %v2157_v62  ;;  %v2183_v61 = vpack.c.bf16 %v426_v59, %v425_v58  ;;  %v459_v62 = vld [vmem:[#allocation7 + $0x140] sm:$0xff]  ;;  %v444_v2 = vld [vmem:[#allocation7 + $0xc8] sm:$0xff]  ;;  %v461_v6 = vld [vmem:[#allocation7 + $0x150] sm:$0xff] }
  0xca   :  { %2162 = vmatprep.subr.bf16.mxu1 %v2161_v7  ;;  %v2217_v0 = vpack.c.bf16 %v460_v63, %v459_v62  ;;  %v443_v1 = vld [vmem:[#allocation7 + $0xc0] sm:$0xff]  ;;  %v428_v5 = vld [vmem:[#allocation7 + $0x48] sm:$0xff]  ;;  %v445_v10 = vld [vmem:[#allocation7 + $0xd0] sm:$0xff] }
  0xcb   :  { %2132 = vmatpush3.bf16.msra.mxu0 %v2131_v8  ;;  %v2185_v3 = vpack.c.bf16 %v444_v2, %v443_v1  ;;  %v427_v4 = vld [vmem:[#allocation7 + $0x40] sm:$0xff]  ;;  %v462_v8 = vld [vmem:[#allocation7 + $0x158] sm:$0xff]  ;;  %v429_v13 = vld [vmem:[#allocation7 + $0x50] sm:$0xff] }
  0xcc   :  { %2134 = vmatprep.subr.bf16.mxu0 %v2133_v11  ;;  %v2221_v9 = vpack.c.bf16 %v462_v8, %v461_v6  ;;  %v446_v11 = vld [vmem:[#allocation7 + $0xd8] sm:$0xff]  ;;  %v447_v19 = vld [vmem:[#allocation7 + $0xe0] sm:$0xff]  ;;  %v448_v20 = vld [vmem:[#allocation7 + $0xe8] sm:$0xff] }
  0xcd   :  { %2164 = vmatpush3.bf16.msra.mxu1 %v2161_v7  ;;  %v2187_v7 = vpack.c.bf16 %v428_v5, %v427_v4  ;;  %v2189_v12 = vpack.c.bf16 %v446_v11, %v445_v10  ;;  %v430_v14 = vld [vmem:[#allocation7 + $0x58] sm:$0xff]  ;;  %v2193_v21 = vpack.c.bf16 %v448_v20, %v447_v19  ;;  %v432_v23 = vld [vmem:[#allocation7 + $0x68] sm:$0xff]  ;;  %v465_v24 = vld [vmem:[#allocation7 + $0x170] sm:$0xff] }
  0xce   :  { %2166 = vmatprep.subr.bf16.mxu1 %v2165_v16  ;;  %v2191_v15 = vpack.c.bf16 %v430_v14, %v429_v13  ;;  %v466_v26 = vld [vmem:[#allocation7 + $0x178] sm:$0xff]  ;;  %v433_v32 = vld [vmem:[#allocation7 + $0x70] sm:$0xff]  ;;  %v626_v36 = vld [vmem:[#allocation8] sm:$0xff] }
  0xcf   :  { %2136 = vmatpush3.bf16.msra.mxu0 %v2135_v17  ;;  %v464_v17 = vld [vmem:[#allocation7 + $0x168] sm:$0xff]  ;;  %v629_v58 = vld [vmem:[#allocation8 + $0x18] sm:$0xff]  ;;  %v630_v4 = vld [vmem:[#allocation8 + $0x20] sm:$0xff] }
  0xd0   :  { %2170 = vmatprep.subr.bf16.mxu0 %v2169_v22  ;;  %v431_v22 = vld [vmem:[#allocation7 + $0x60] sm:$0xff]  ;;  %v627_v37 = vld [vmem:[#allocation8 + $0x8] sm:$0xff]  ;;  %v633_v8 = vld [vmem:[#allocation8 + $0x38] sm:$0xff] }
  0xd1   :  { %2168 = vmatpush3.bf16.msra.mxu1 %v2165_v16  ;;  %v463_v16 = vld [vmem:[#allocation7 + $0x160] sm:$0xff]  ;;  %v2195_v25 = vpack.c.bf16 %v432_v23, %v431_v22  ;;  %v2233_v38 = vpack.c.bf16 %v627_v37, %v626_v36  ;;  %v631_v5 = vld [vmem:[#allocation8 + $0x28] sm:$0xff]  ;;  %v637_v13 = vld [vmem:[#allocation8 + $0x58] sm:$0xff] }
  0xd2   :  { %1509 = vmatmul.mubr.msk.f32.vlgmr.msra.gmra.mrb[0].mxu0 %vm3047_vm3, %v188_v28  ;;  %2202 = vmatprep.subr.bf16.mxu1 %v2201_v27  ;;  %v2225_v18 = vpack.c.bf16 %v464_v17, %v463_v16  ;;  %v449_v28 = vld [vmem:[#allocation7 + $0xf0] sm:$0xff]  ;;  %v2241_v6 = vpack.c.bf16 %v631_v5, %v630_v4  ;;  %v634_v10 = vld [vmem:[#allocation8 + $0x40] sm:$0xff]  ;;  %v635_v55 = vld [vmem:[#allocation8 + $0x48] sm:$0xff] }
  0xd3   :  { %324 = vmatprep.mubr.f32.mxu0 %v195_v33  ;;  %2172 = vmatpush3.bf16.msra.mxu0 %v2171_v30  ;;  %v450_v30 = vld [vmem:[#allocation7 + $0xf8] sm:$0xff]  ;;  %v2249_v11 = vpack.c.bf16 %v635_v55, %v634_v10  ;;  %v639_v16 = vld [vmem:[#allocation8 + $0x68] sm:$0xff]  ;;  %v774_v20 = vld [vmem:[#allocation10 + $0x100] sm:$0xff] }
  0xd4   :  { %1858 = vmatmul.mubr.f32.vlgmr.msra.gmra.mrb[0].mxu1 %v3021_v49  ;;  %2174 = vmatprep.subr.bf16.mxu0 %v2173_v34  ;;  %v2197_v31 = vpack.c.bf16 %v450_v30, %v449_v28  ;;  %v434_v33 = vld [vmem:[#allocation7 + $0x78] sm:$0xff]  ;;  %v758_v23 = vld [vmem:[#allocation10 + $0x80] sm:$0xff]  ;;  %v776_v28 = vld [vmem:[#allocation10 + $0x110] sm:$0xff] }
  0xd5   :  { %2204 = vmatpush3.bf16.msra.mxu1 %v2201_v27  ;;  %v2229_v27 = vpack.c.bf16 %v466_v26, %v465_v24  ;;  %v2199_v34 = vpack.c.bf16 %v434_v33, %v433_v32  ;;  %v641_v19 = vld [vmem:[#allocation8 + $0x78] sm:$0xff]  ;;  %v759_v24 = vld [vmem:[#allocation10 + $0x88] sm:$0xff]  ;;  %v742_v26 = vld [vmem:[#allocation10] sm:$0xff] }
  0xd6   :  { %325 = vmatmul.mubr.f32.gmra.mrb[2].mxu0 %v187_v41  ;;  %2206 = vmatprep.subr.bf16.mxu1 %v2205_v40  ;;  %v1505_v41 = vld [vmem:[%s3160_s2] ss:$0 sm:$0xff]  ;;  %v761_v33 = vld [vmem:[#allocation10 + $0x98] sm:$0xff]  ;;  %v750_v4 = vld [vmem:[#allocation10 + $0x40] sm:$0xff] }
  0xd7   :  { %2176 = vmatpush3.bf16.msra.mxu0 %v2175_v42  ;;  %v760_v32 = vld [vmem:[#allocation10 + $0x90] sm:$0xff]  ;;  %v751_v5 = vld [vmem:[#allocation10 + $0x48] sm:$0xff]  ;;  %vm3098_vm5 = vmneg %vm730_vm4 }
  0xd8   :  { %2178 = vmatprep.subr.bf16.mxu0 %v2177_v45  ;;  %v2269_v36 = vpack.c.bf16 %v761_v33, %v760_v32  ;;  %v744_v37 = vld [vmem:[#allocation10 + $0x10] sm:$0xff]  ;;  %v994_v32 = vld [vmem:[#allocation11 + $0x108] sm:$0xff]  ;;  %v977_v33 = vld [vmem:[#allocation11 + $0x80] sm:$0xff] }
  0xd9   :  { %2208 = vmatpush3.bf16.msra.mxu1 %v2205_v40  ;;  %v752_v55 = vld [vmem:[#allocation10 + $0x50] sm:$0xff]  ;;  %v1181_v29 = vld [vmem:[#allocation13 + $0x48] sm:$0xff] }
  0xda   :  { %2210 = vmatprep.subr.bf16.mxu1 %v2209_v52 }
  0xdb   :  { %2180 = vmatpush3.bf16.msra.mxu0 %v2179_v53 }
  0xdc   :  { %2182 = vmatprep.subr.bf16.mxu0 %v2181_v57  ;;  %v628_v57 = vld [vmem:[#allocation8 + $0x10] sm:$0xff] }
  0xdd   :  { %2212 = vmatpush3.bf16.msra.mxu1 %v2209_v52  ;;  %v2237_v63 = vpack.c.bf16 %v629_v58, %v628_v57  ;;  %v783_v57 = vld [vmem:[#allocation10 + $0x148] sm:$0xff] }
  0xde   :  { %2214 = vmatprep.subr.bf16.mxu1 %v2213_v60 }
  0xdf   :  { %2184 = vmatpush3.bf16.msra.mxu0 %v2183_v61 }
  0xe0   :  { %2186 = vmatprep.subr.bf16.mxu0 %v2185_v3 }
  0xe1   :  { %2216 = vmatpush3.bf16.msra.mxu1 %v2213_v60 }
  0xe2   :  { %2218 = vmatprep.subr.bf16.mxu1 %v2217_v0 }
  0xe3   :  { %2188 = vmatpush3.bf16.msra.mxu0 %v2187_v7  ;;  %v632_v7 = vld [vmem:[#allocation8 + $0x30] sm:$0xff] }
  0xe4   :  { %2190 = vmatprep.subr.bf16.mxu0 %v2189_v12  ;;  %v636_v12 = vld [vmem:[#allocation8 + $0x50] sm:$0xff] }
  0xe5   :  { %2220 = vmatpush3.bf16.msra.mxu1 %v2217_v0  ;;  %v2253_v14 = vpack.c.bf16 %v637_v13, %v636_v12  ;;  %v786_v12 = vld [vmem:[#allocation10 + $0x160] sm:$0xff] }
  0xe6   :  { %2222 = vmatprep.subr.bf16.mxu1 %v2221_v9 }
  0xe7   :  { %2192 = vmatpush3.bf16.msra.mxu0 %v2191_v15  ;;  %v638_v15 = vld [vmem:[#allocation8 + $0x60] sm:$0xff] }
  0xe8   :  { %2194 = vmatprep.subr.bf16.mxu0 %v2193_v21  ;;  %v2257_v17 = vpack.c.bf16 %v639_v16, %v638_v15  ;;  %v775_v21 = vld [vmem:[#allocation10 + $0x108] sm:$0xff]  ;;  %v770_v16 = vld [vmem:[#allocation10 + $0xe0] sm:$0xff] }
  0xe9   :  { %2224 = vmatpush3.bf16.msra.mxu1 %v2221_v9  ;;  %v2245_v9 = vpack.c.bf16 %v633_v8, %v632_v7  ;;  %v2297_v22 = vpack.c.bf16 %v775_v21, %v774_v20  ;;  %v2283_v7 = vpack.c.bf16 %v751_v5, %v750_v4  ;;  %v768_v8 = vld [vmem:[#allocation10 + $0xd0] sm:$0xff] }
  0xea   :  { %2226 = vmatprep.subr.bf16.mxu1 %v2225_v18  ;;  %v788_v20 = vld [vmem:[#allocation10 + $0x170] sm:$0xff] }
  0xeb   :  { %2196 = vmatpush3.bf16.msra.mxu0 %v2195_v25  ;;  %v2265_v25 = vpack.c.bf16 %v759_v24, %v758_v23  ;;  %v772_v24 = vld [vmem:[#allocation10 + $0xf0] sm:$0xff] }
  0xec   :  { %2198 = vmatprep.subr.bf16.mxu0 %v2197_v31  ;;  %v777_v31 = vld [vmem:[#allocation10 + $0x118] sm:$0xff] }
  0xed   :  { %2228 = vmatpush3.bf16.msra.mxu1 %v2225_v18  ;;  %v640_v18 = vld [vmem:[#allocation8 + $0x70] sm:$0xff] }
  0xee   :  { %2230 = vmatprep.subr.bf16.mxu1 %v2229_v27 }
  0xef   :  { %2200 = vmatpush3.bf16.msra.mxu0 %v2199_v34  ;;  %v2301_v34 = vpack.c.bf16 %v777_v31, %v776_v28  ;;  %v757_v28 = vld [vmem:[#allocation10 + $0x78] sm:$0xff]  ;;  %v993_v31 = vld [vmem:[#allocation11 + $0x100] sm:$0xff] }
  0xf0   :  { %2234 = vmatprep.subr.bf16.mxu0 %v2233_v38 }
  0xf1   :  { %2232 = vmatpush3.bf16.msra.mxu1 %v2229_v27  ;;  %v743_v27 = vld [vmem:[#allocation10 + $0x8] sm:$0xff] }
  0xf2   :  { %v2267_v30 = vpack.c.bf16 %v743_v27, %v742_v26  ;;  %2266 = vmatprep.subr.bf16.mxu1 %v2265_v25  ;;  %v773_v25 = vld [vmem:[#allocation10 + $0xf8] sm:$0xff]  ;;  %v756_v27 = vld [vmem:[#allocation10 + $0x70] sm:$0xff] }
  0xf3   :  { %v2293_v26 = vpack.c.bf16 %v773_v25, %v772_v24 }
 0x1a5   :  { %v1561_v39 = vpop.f32.mrb[0].mxu0 }
 0x1a6   :  { %v1562_v40 = vpop.f32.mrb[1].mxu0 }
 0x1a7   :  { %v1563_v42 = vadd.f32 %v1562_v40, %v1561_v39  ;;  %v1859_v43 = vpop.f32.mrb[0].mxu1  ;;  %v779_v40 = vld [vmem:[#allocation10 + $0x128] sm:$0xff] }
 0x1a8   :  { %v396_v44 = vpop.f32.mrb[1].mxu1 }
 0x1a9   :  { %v1564_v45 = vpop.f32.mrb[2].mxu0  ;;  %v322_v46 = vadd.f32 %v1563_v42, %v1505_v41  ;;  %v763_v42 = vld [vmem:[#allocation10 + $0xa8] sm:$0xff] }
 0x1aa   :  { %v1565_v47 = vpop.f32.mrb[3].mxu0 }
 0x1ab   :  { %v1566_v50 = vadd.f32 %v1565_v47, %v1564_v45  ;;  %v397_v51 = vadd.f32 %v396_v44, %v322_v46  ;;  %v746_v45 = vld [vmem:[#allocation10 + $0x20] sm:$0xff]  ;;  %v747_v46 = vld [vmem:[#allocation10 + $0x28] sm:$0xff]  ;;  %v780_v47 = vld [vmem:[#allocation10 + $0x130] sm:$0xff] }
 0x1ad   :  { %v327_v52 = vadd.f32 %v1566_v50, %v1505_v41  ;;  %v405_v53 = vmax.f32 %v397_v51, 0.0  ;;  %v762_v41 = vld [vmem:[#allocation10 + $0xa0] sm:$0xff]  ;;  %v781_v50 = vld [vmem:[#allocation10 + $0x138] sm:$0xff]  ;;  %v764_v51 = vld [vmem:[#allocation10 + $0xb0] sm:$0xff] }
 0x1ae   :  { %v2273_v44 = vpack.c.bf16 %v763_v42, %v762_v41 }
 0x1af   :  { %v402_v54 = vadd.f32 %v1859_v43, %v327_v52  ;;  %1892 = vmatprep.mubr.f32.mxu1 %v405_v53  ;;  %v407_v60 = vrot.slane %v405_v53, 6  ;;  %v413_v61 = vrot.slane %v405_v53, 7  ;;  %v765_v52 = vld [vmem:[#allocation10 + $0xb8] sm:$0xff]  ;;  %v2309_v53 = vpack.c.bf16 %v781_v50, %v780_v47 }
 0x1b0   :  { %v2277_v58 = vpack.c.bf16 %v765_v52, %v764_v51  ;;  %v1515_v52 = vld [vmem:[%s3164_s6] ss:$0 sm:$0xff] }
 0x1b1   :  { %v406_v56 = vmax.f32 %v402_v54, 0.0  ;;  %v2275_v54 = vpack.c.bf16 %v747_v46, %v746_v45 }
 0x1b3   :  { %v408_v59 = vrot.slane %v406_v56, 6  ;;  %1893 = vmatmul.mubr.f32.vlgmr.msra.gmra.mrb[2].mxu1 %v406_v56  ;;  %v414_v62 = vrot.slane %v406_v56, 7  ;;  %v782_v56 = vld [vmem:[#allocation10 + $0x140] sm:$0xff] }
 0x1b4   :  { %2268 = vmatpush3.bf16.msra.mxu1 %v2267_v30  ;;  %v2295_v30 = vpack.c.bf16 %v757_v28, %v756_v27  ;;  %v966_v27 = vld [vmem:[#allocation11 + $0x28] sm:$0xff] }
 0x1b5   :  { %v416_v0 = vsel %vm194_vm0, %v414_v62, %v413_v61  ;;  %v410_v1 = vsel %vm186_vm2, %v408_v59, %v407_v60  ;;  %v415_v2 = vsel %vm194_vm0, %v413_v61, %v414_v62  ;;  %v409_v3 = vsel %vm186_vm2, %v407_v60, %v408_v59  ;;  %2270 = vmatprep.subr.bf16.mxu1 %v2269_v36  ;;  %v748_v59 = vld [vmem:[#allocation10 + $0x30] sm:$0xff]  ;;  %v749_v60 = vld [vmem:[#allocation10 + $0x38] sm:$0xff]  ;;  %v766_v61 = vld [vmem:[#allocation10 + $0xc0] sm:$0xff] }
 0x1b6   :  { %1512 = vmatprep.mubr.msk.f32.mxu0 %vm3027_vm1, %v416_v0  ;;  %v767_v62 = vld [vmem:[#allocation10 + $0xc8] sm:$0xff]  ;;  %v2279_v0 = vpack.c.bf16 %v749_v60, %v748_v59 }
 0x1b7   :  { %1514 = vmatmul.mubr.msk.f32.vlgmr.msra.gmra.mrb[4].mxu0 %vm3047_vm3, %v410_v1  ;;  %v784_v1 = vld [vmem:[#allocation10 + $0x150] sm:$0xff]  ;;  %v978_v36 = vld [vmem:[#allocation11 + $0x88] sm:$0xff] }
 0x1b8   :  { %2236 = vmatpush3.bf16.msra.mxu0 %v2233_v38  ;;  %543 = vmatprep.mubr.f32.mxu0 %v415_v2  ;;  %v778_v38 = vld [vmem:[#allocation10 + $0x120] sm:$0xff]  ;;  %v785_v2 = vld [vmem:[#allocation10 + $0x158] sm:$0xff] }
 0x1b9   :  { %2238 = vmatprep.subr.bf16.mxu0 %v2237_v63  ;;  %v2305_v43 = vpack.c.bf16 %v779_v40, %v778_v38  ;;  %v1510_v40 = vld [vmem:[%s3162_s4] ss:$0 sm:$0xff] }
 0x1bb   :  { %544 = vmatmul.mubr.f32.gmra.mrb[6].mxu0 %v409_v3  ;;  %v2281_v3 = vpack.c.bf16 %v767_v62, %v766_v61  ;;  %v995_v62 = vld [vmem:[#allocation11 + $0x110] sm:$0xff] }
 0x1bc   :  { %2240 = vmatpush3.bf16.msra.mxu0 %v2237_v63  ;;  %1927 = vmatprep.mubr.f32.mxu0 %v3019_v48  ;;  %v2261_v48 = vpack.c.bf16 %v641_v19, %v640_v18  ;;  %v2313_v63 = vpack.c.bf16 %v783_v57, %v782_v56  ;;  %v754_v19 = vld [vmem:[#allocation10 + $0x60] sm:$0xff] }
 0x1bd   :  { %2242 = vmatprep.subr.bf16.mxu0 %v2241_v6 }
 0x1c0   :  { %2244 = vmatpush3.bf16.msra.mxu0 %v2241_v6  ;;  %v2317_v6 = vpack.c.bf16 %v785_v2, %v784_v1  ;;  %v961_v2 = vld [vmem:[#allocation11] sm:$0xff] }
 0x1c1   :  { %2246 = vmatprep.subr.bf16.mxu0 %v2245_v9 }
 0x1c4   :  { %2248 = vmatpush3.bf16.msra.mxu0 %v2245_v9  ;;  %v769_v9 = vld [vmem:[#allocation10 + $0xd8] sm:$0xff] }
 0x1c5   :  { %2250 = vmatprep.subr.bf16.mxu0 %v2249_v11  ;;  %v2285_v10 = vpack.c.bf16 %v769_v9, %v768_v8  ;;  %v980_v8 = vld [vmem:[#allocation11 + $0x98] sm:$0xff] }
 0x1c8   :  { %2252 = vmatpush3.bf16.msra.mxu0 %v2249_v11  ;;  %v753_v11 = vld [vmem:[#allocation10 + $0x58] sm:$0xff] }
 0x1c9   :  { %2254 = vmatprep.subr.bf16.mxu0 %v2253_v14  ;;  %v2287_v13 = vpack.c.bf16 %v753_v11, %v752_v55  ;;  %v997_v55 = vld [vmem:[#allocation11 + $0x120] sm:$0xff]  ;;  %v998_v11 = vld [vmem:[#allocation11 + $0x128] sm:$0xff] }
 0x1cc   :  { %2256 = vmatpush3.bf16.msra.mxu0 %v2253_v14  ;;  %v787_v14 = vld [vmem:[#allocation10 + $0x168] sm:$0xff] }
 0x1cd   :  { %2258 = vmatprep.subr.bf16.mxu0 %v2257_v17  ;;  %v2321_v15 = vpack.c.bf16 %v787_v14, %v786_v12  ;;  %v1183_v12 = vld [vmem:[#allocation13 + $0x58] sm:$0xff] }
 0x1d0   :  { %2260 = vmatpush3.bf16.msra.mxu0 %v2257_v17  ;;  %v771_v17 = vld [vmem:[#allocation10 + $0xe8] sm:$0xff] }
 0x1d1   :  { %2262 = vmatprep.subr.bf16.mxu0 %v2261_v48  ;;  %v2289_v18 = vpack.c.bf16 %v771_v17, %v770_v16  ;;  %v963_v17 = vld [vmem:[#allocation11 + $0x10] sm:$0xff] }
 0x1d4   :  { %2264 = vmatpush3.bf16.msra.mxu0 %v2261_v48  ;;  %v755_v48 = vld [vmem:[#allocation10 + $0x68] sm:$0xff] }
 0x1d5   :  { %2298 = vmatprep.subr.bf16.mxu0 %v2297_v22  ;;  %v2291_v21 = vpack.c.bf16 %v755_v48, %v754_v19  ;;  %v2369_v19 = vpack.c.bf16 %v998_v11, %v997_v55  ;;  %v981_v48 = vld [vmem:[#allocation11 + $0xa0] sm:$0xff]  ;;  %v975_v11 = vld [vmem:[#allocation11 + $0x70] sm:$0xff] }
 0x1d7   :  { %1928 = vmatmul.mubr.f32.vlgmr.msra.gmra.mrb[8].mxu0 %v3021_v49  ;;  %v745_v49 = vld [vmem:[#allocation10 + $0x18] sm:$0xff] }
 0x1d8   :  { %2300 = vmatpush3.bf16.msra.mxu0 %v2297_v22  ;;  %v2271_v39 = vpack.c.bf16 %v745_v49, %v744_v37  ;;  %v789_v22 = vld [vmem:[#allocation10 + $0x178] sm:$0xff]  ;;  %v2329_v37 = vpack.c.bf16 %v978_v36, %v977_v33 }
 0x1d9   :  { %2302 = vmatprep.subr.bf16.mxu0 %v2301_v34  ;;  %v2325_v23 = vpack.c.bf16 %v789_v22, %v788_v20  ;;  %v982_v20 = vld [vmem:[#allocation11 + $0xa8] sm:$0xff]  ;;  %v999_v22 = vld [vmem:[#allocation11 + $0x130] sm:$0xff]  ;;  %v984_v33 = vld [vmem:[#allocation11 + $0xb8] sm:$0xff] }
 0x1da   :  { %2272 = vmatpush3.bf16.msra.mxu1 %v2271_v39  ;;  %v2337_v25 = vpack.c.bf16 %v982_v20, %v981_v48  ;;  %v1516_v20 = vld [vmem:[%s3166_s8] ss:$0 sm:$0xff] }
 0x1db   :  { %2274 = vmatprep.subr.bf16.mxu1 %v2273_v44 }
 0x1dc   :  { %2304 = vmatpush3.bf16.msra.mxu0 %v2301_v34  ;;  %v2361_v34 = vpack.c.bf16 %v994_v32, %v993_v31  ;;  %v983_v32 = vld [vmem:[#allocation11 + $0xb0] sm:$0xff] }
 0x1dd   :  { %2306 = vmatprep.subr.bf16.mxu0 %v2305_v43  ;;  %v2341_v36 = vpack.c.bf16 %v984_v33, %v983_v32  ;;  %v1174_v33 = vld [vmem:[#allocation13 + $0x10] sm:$0xff] }
 0x1de   :  { %2276 = vmatpush3.bf16.msra.mxu1 %v2275_v54 }
 0x1df   :  { %2278 = vmatprep.subr.bf16.mxu1 %v2277_v58 }
 0x1e0   :  { %2308 = vmatpush3.bf16.msra.mxu0 %v2305_v43 }
 0x1e1   :  { %2310 = vmatprep.subr.bf16.mxu0 %v2309_v53 }
 0x1e2   :  { %2280 = vmatpush3.bf16.msra.mxu1 %v2279_v0 }
 0x1e3   :  { %2282 = vmatprep.subr.bf16.mxu1 %v2281_v3  ;;  %v962_v3 = vld [vmem:[#allocation11 + $0x8] sm:$0xff] }
 0x1e4   :  { %2312 = vmatpush3.bf16.msra.mxu0 %v2309_v53 }
 0x1e5   :  { %2314 = vmatprep.subr.bf16.mxu0 %v2313_v63 }
 0x1e6   :  { %2284 = vmatpush3.bf16.msra.mxu1 %v2283_v7  ;;  %v979_v7 = vld [vmem:[#allocation11 + $0x90] sm:$0xff] }
 0x1e7   :  { %2286 = vmatprep.subr.bf16.mxu1 %v2285_v10  ;;  %v2333_v16 = vpack.c.bf16 %v980_v8, %v979_v7 }
 0x1e8   :  { %2316 = vmatpush3.bf16.msra.mxu0 %v2313_v63  ;;  %v996_v63 = vld [vmem:[#allocation11 + $0x118] sm:$0xff] }
 0x1e9   :  { %2318 = vmatprep.subr.bf16.mxu0 %v2317_v6 }
 0x1ea   :  { %2288 = vmatpush3.bf16.msra.mxu1 %v2287_v13  ;;  %v2331_v13 = vpack.c.bf16 %v962_v3, %v961_v2  ;;  %v1007_v2 = vld [vmem:[#allocation11 + $0x170] sm:$0xff] }
 0x1eb   :  { %2290 = vmatprep.subr.bf16.mxu1 %v2289_v18  ;;  %v964_v18 = vld [vmem:[#allocation11 + $0x18] sm:$0xff] }
 0x1ec   :  { %2320 = vmatpush3.bf16.msra.mxu0 %v2317_v6  ;;  %v2365_v6 = vpack.c.bf16 %v996_v63, %v995_v62  ;;  %v2335_v24 = vpack.c.bf16 %v964_v18, %v963_v17  ;;  %v989_v62 = vld [vmem:[#allocation11 + $0xe0] sm:$0xff]  ;;  %v990_v63 = vld [vmem:[#allocation11 + $0xe8] sm:$0xff] }
 0x1ed   :  { %2322 = vmatprep.subr.bf16.mxu0 %v2321_v15  ;;  %v2353_v3 = vpack.c.bf16 %v990_v63, %v989_v62  ;;  %v1270_v63 = vld [vmem:[#allocation14] sm:$0xff] }
 0x1ee   :  { %2292 = vmatpush3.bf16.msra.mxu1 %v2291_v21 }
 0x1ef   :  { %2294 = vmatprep.subr.bf16.mxu1 %v2293_v26  ;;  %v965_v26 = vld [vmem:[#allocation11 + $0x20] sm:$0xff] }
 0x1f0   :  { %2324 = vmatpush3.bf16.msra.mxu0 %v2321_v15  ;;  %v2339_v31 = vpack.c.bf16 %v966_v27, %v965_v26 }
 0x1f1   :  { %2326 = vmatprep.subr.bf16.mxu0 %v2325_v23 }
 0x1f2   :  { %2296 = vmatpush3.bf16.msra.mxu1 %v2295_v30 }
 0x1f3   :  { %2330 = vmatprep.subr.bf16.mxu1 %v2329_v37  ;;  %v1002_v37 = vld [vmem:[#allocation11 + $0x148] sm:$0xff] }
 0x1f4   :  { %2328 = vmatpush3.bf16.msra.mxu0 %v2325_v23  ;;  %v1000_v23 = vld [vmem:[#allocation11 + $0x138] sm:$0xff] }
 0x1f5   :  { %2362 = vmatprep.subr.bf16.mxu0 %v2361_v34  ;;  %v2373_v30 = vpack.c.bf16 %v1000_v23, %v999_v22 }
 0x286   :  { %v1894_v49 = vpop.f32.mrb[2].mxu1 }
 0x287   :  { %v615_v38 = vpop.f32.mrb[3].mxu1 }
 0x28a   :  { %v1617_v39 = vpop.f32.mrb[4].mxu0 }
 0x28b   :  { %v1618_v41 = vpop.f32.mrb[5].mxu0 }
 0x28c   :  { %v1619_v42 = vadd.f32 %v1618_v41, %v1617_v39  ;;  %v985_v41 = vld [vmem:[#allocation11 + $0xc0] sm:$0xff] }
 0x28e   :  { %v541_v43 = vadd.f32 %v1619_v42, %v1510_v40  ;;  %v1620_v44 = vpop.f32.mrb[6].mxu0  ;;  %v986_v42 = vld [vmem:[#allocation11 + $0xc8] sm:$0xff] }
 0x28f   :  { %v1621_v45 = vpop.f32.mrb[7].mxu0 }
 0x290   :  { %v616_v46 = vadd.f32 %v615_v38, %v541_v43  ;;  %v1622_v47 = vadd.f32 %v1621_v45, %v1620_v44  ;;  %v968_v38 = vld [vmem:[#allocation11 + $0x38] sm:$0xff]  ;;  %v1003_v43 = vld [vmem:[#allocation11 + $0x150] sm:$0xff]  ;;  %v2345_v44 = vpack.c.bf16 %v986_v42, %v985_v41 }
 0x291   :  { %v1004_v45 = vld [vmem:[#allocation11 + $0x158] sm:$0xff] }
 0x292   :  { %v546_v50 = vadd.f32 %v1622_v47, %v1510_v40  ;;  %v624_v58 = vmax.f32 %v616_v46, 0.0  ;;  %v969_v46 = vld [vmem:[#allocation11 + $0x40] sm:$0xff]  ;;  %v2381_v47 = vpack.c.bf16 %v1004_v45, %v1003_v43  ;;  %v1177_v45 = vld [vmem:[#allocation13 + $0x28] sm:$0xff] }
 0x294   :  { %v621_v51 = vadd.f32 %v1894_v49, %v546_v50  ;;  %v967_v49 = vld [vmem:[#allocation11 + $0x30] sm:$0xff]  ;;  %v970_v50 = vld [vmem:[#allocation11 + $0x48] sm:$0xff] }
 0x295   :  { %v2343_v40 = vpack.c.bf16 %v968_v38, %v967_v49 }
 0x296   :  { %v625_v54 = vmax.f32 %v621_v51, 0.0  ;;  %v2347_v51 = vpack.c.bf16 %v970_v50, %v969_v46  ;;  %v1179_v50 = vld [vmem:[#allocation13 + $0x38] sm:$0xff] }
 0x2aa   :  { %v1929_v53 = vpop.f32.mrb[8].mxu0 }
 0x2ab   :  { %v721_v56 = vadd.f32 %v1929_v53, %v1515_v52  ;;  %v715_v57 = vpop.f32.mrb[9].mxu0  ;;  %v988_v53 = vld [vmem:[#allocation11 + $0xd8] sm:$0xff] }
 0x2ac   :  { %v716_v59 = vadd.f32 %v1515_v52, %v715_v57  ;;  %v987_v52 = vld [vmem:[#allocation11 + $0xd0] sm:$0xff]  ;;  %v1006_v57 = vld [vmem:[#allocation11 + $0x168] sm:$0xff] }
 0x2ad   :  { %v725_v60 = vadd.f32 %v721_v56, %v625_v54  ;;  %v1005_v54 = vld [vmem:[#allocation11 + $0x160] sm:$0xff]  ;;  %v2349_v56 = vpack.c.bf16 %v988_v53, %v987_v52 }
 0x2ae   :  { %v724_v61 = vadd.f32 %v716_v59, %v624_v58  ;;  %v971_v58 = vld [vmem:[#allocation11 + $0x50] sm:$0xff]  ;;  %v972_v59 = vld [vmem:[#allocation11 + $0x58] sm:$0xff]  ;;  %v1180_v52 = vld [vmem:[#allocation13 + $0x40] sm:$0xff] }
 0x2af   :  { %v3085_v0 = vmax.f32 %v725_v60, 0.0  ;;  %v2385_v60 = vpack.c.bf16 %v1006_v57, %v1005_v54  ;;  %v2409_v53 = vpack.c.bf16 %v1181_v29, %v1180_v52  ;;  %v1182_v54 = vld [vmem:[#allocation13 + $0x50] sm:$0xff]  ;;  %v1184_v57 = vld [vmem:[#allocation13 + $0x60] sm:$0xff] }
 0x2b0   :  { %v3087_v1 = vmax.f32 %v724_v61, 0.0  ;;  %v2351_v61 = vpack.c.bf16 %v972_v59, %v971_v58  ;;  %v1185_v58 = vld [vmem:[#allocation13 + $0x68] sm:$0xff] }
 0x2b1   :  { %v737_v4 = vrot.slane %v3085_v0, 6  ;;  %v729_v5 = vrot.slane %v3085_v0, 4  ;;  %v2417_v59 = vpack.c.bf16 %v1185_v58, %v1184_v57  ;;  %v1382_v57 = vld [vmem:[#allocation16 + $0x40] sm:$0xff]  ;;  %v1383_v58 = vld [vmem:[#allocation16 + $0x48] sm:$0xff] }
 0x2b2   :  { %1962 = vmatprep.mubr.f32.mxu0 %v3087_v1  ;;  %v736_v9 = vrot.slane %v3087_v1, 6  ;;  %v728_v10 = vrot.slane %v3087_v1, 4 }
 0x2b3   :  { %1963 = vmatmul.mubr.f32.vlgmr.msra.gmra.mrb[10].mxu0 %v3085_v0 }
 0x2b4   :  { %v739_v14 = vsel %vm186_vm2, %v737_v4, %v736_v9  ;;  %v732_v15 = vsel %vm730_vm4, %v729_v5, %v728_v10  ;;  %2364 = vmatpush3.bf16.msra.mxu0 %v2361_v34  ;;  %v738_v21 = vsel %vm186_vm2, %v736_v9, %v737_v4  ;;  %v731_v28 = vsel %vm730_vm4, %v728_v10, %v729_v5  ;;  %v1001_v34 = vld [vmem:[#allocation11 + $0x140] sm:$0xff]  ;;  %v1008_v4 = vld [vmem:[#allocation11 + $0x178] sm:$0xff]  ;;  %v991_v9 = vld [vmem:[#allocation11 + $0xf0] sm:$0xff] }
 0x2b5   :  { %1518 = vmatprep.mubr.msk.f32.mxu1 %vm3047_vm3, %v739_v14  ;;  %2366 = vmatprep.subr.bf16.mxu0 %v2365_v6  ;;  %v2377_v39 = vpack.c.bf16 %v1002_v37, %v1001_v34  ;;  %v973_v5 = vld [vmem:[#allocation11 + $0x60] sm:$0xff]  ;;  %v2389_v7 = vpack.c.bf16 %v1008_v4, %v1007_v2  ;;  %v992_v10 = vld [vmem:[#allocation11 + $0xf8] sm:$0xff]  ;;  %v1271_v2 = vld [vmem:[#allocation14 + $0x8] sm:$0xff] }
 0x2b6   :  { %1520 = vmatmul.mubr.msk.f32.vlgmr.msra.gmra.mrb[4].mxu1 %vm3098_vm5, %v732_v15  ;;  %v2357_v55 = vpack.c.bf16 %v992_v10, %v991_v9  ;;  %v1172_v15 = vld [vmem:[#allocation13] sm:$0xff]  ;;  %v1175_v34 = vld [vmem:[#allocation13 + $0x18] sm:$0xff]  ;;  %v1272_v4 = vld [vmem:[#allocation14 + $0x10] sm:$0xff] }
 0x2b7   :  { %866 = vmatprep.mubr.f32.mxu1 %v738_v21  ;;  %2332 = vmatpush3.bf16.msra.mxu1 %v2331_v13  ;;  %v976_v13 = vld [vmem:[#allocation11 + $0x78] sm:$0xff] }
 0x2b8   :  { %2368 = vmatpush3.bf16.msra.mxu0 %v2365_v6  ;;  %2334 = vmatprep.subr.bf16.mxu1 %v2333_v16  ;;  %v974_v6 = vld [vmem:[#allocation11 + $0x68] sm:$0xff]  ;;  %v2359_v14 = vpack.c.bf16 %v976_v13, %v975_v11  ;;  %v2518_v9 = vld [vmem:[#allocation2 + $0x8] sm:$0xff] }
 0x2b9   :  { %2370 = vmatprep.subr.bf16.mxu0 %v2369_v19  ;;  %v2355_v8 = vpack.c.bf16 %v974_v6, %v973_v5  ;;  %v1173_v16 = vld [vmem:[#allocation13 + $0x8] sm:$0xff]  ;;  %v1273_v5 = vld [vmem:[#allocation14 + $0x18] sm:$0xff] }
 0x2ba   :  { %867 = vmatmul.mubr.f32.gmra.mrb[6].mxu1 %v731_v28  ;;  %v2393_v17 = vpack.c.bf16 %v1173_v16, %v1172_v15  ;;  %v2429_v6 = vpack.c.bf16 %v1273_v5, %v1272_v4  ;;  %v1277_v11 = vld [vmem:[#allocation14 + $0x38] sm:$0xff]  ;;  %v1279_v15 = vld [vmem:[#allocation14 + $0x48] sm:$0xff] }
 0x2bb   :  { %2336 = vmatpush3.bf16.msra.mxu1 %v2335_v24  ;;  %v1389_v4 = vld [vmem:[#allocation16 + $0x78] sm:$0xff] }
 0x2bc   :  { %2372 = vmatpush3.bf16.msra.mxu0 %v2369_v19  ;;  %2338 = vmatprep.subr.bf16.mxu1 %v2337_v25 }
 0x2bd   :  { %2374 = vmatprep.subr.bf16.mxu0 %v2373_v30 }
 0x2bf   :  { %2340 = vmatpush3.bf16.msra.mxu1 %v2339_v31 }
 0x2c0   :  { %2376 = vmatpush3.bf16.msra.mxu0 %v2373_v30  ;;  %2342 = vmatprep.subr.bf16.mxu1 %v2341_v36 }
 0x2c1   :  { %2378 = vmatprep.subr.bf16.mxu0 %v2377_v39 }
 0x2c3   :  { %2344 = vmatpush3.bf16.msra.mxu1 %v2343_v40 }
 0x2c4   :  { %2380 = vmatpush3.bf16.msra.mxu0 %v2377_v39  ;;  %2346 = vmatprep.subr.bf16.mxu1 %v2345_v44  ;;  %v2397_v39 = vpack.c.bf16 %v1175_v34, %v1174_v33  ;;  %v1176_v44 = vld [vmem:[#allocation13 + $0x20] sm:$0xff]  ;;  %v1379_v33 = vld [vmem:[#allocation16 + $0x28] sm:$0xff] }
 0x2c5   :  { %2382 = vmatprep.subr.bf16.mxu0 %v2381_v47  ;;  %v2401_v46 = vpack.c.bf16 %v1177_v45, %v1176_v44 }
 0x2c7   :  { %2348 = vmatpush3.bf16.msra.mxu1 %v2347_v51  ;;  %v2517_v51 = vld [vmem:[#allocation2] sm:$0xff] }
 0x2c8   :  { %2384 = vmatpush3.bf16.msra.mxu0 %v2381_v47  ;;  %2350 = vmatprep.subr.bf16.mxu1 %v2349_v56  ;;  %v1178_v47 = vld [vmem:[#allocation13 + $0x30] sm:$0xff]  ;;  %v2413_v56 = vpack.c.bf16 %v1183_v12, %v1182_v54 }
 0x2c9   :  { %2386 = vmatprep.subr.bf16.mxu0 %v2385_v60  ;;  %v2405_v35 = vpack.c.bf16 %v1179_v50, %v1178_v47 }
 0x2cb   :  { %2352 = vmatpush3.bf16.msra.mxu1 %v2351_v61  ;;  %v1187_v61 = vld [vmem:[#allocation13 + $0x78] sm:$0xff] }
 0x2cc   :  { %2388 = vmatpush3.bf16.msra.mxu0 %v2385_v60  ;;  %2354 = vmatprep.subr.bf16.mxu1 %v2353_v3  ;;  %v1186_v60 = vld [vmem:[#allocation13 + $0x70] sm:$0xff]  ;;  %v2425_v3 = vpack.c.bf16 %v1271_v2, %v1270_v63  ;;  %v1386_v63 = vld [vmem:[#allocation16 + $0x60] sm:$0xff]  ;;  %v1387_v2 = vld [vmem:[#allocation16 + $0x68] sm:$0xff] }
 0x2cd   :  { %2390 = vmatprep.subr.bf16.mxu0 %v2389_v7  ;;  %v2421_v62 = vpack.c.bf16 %v1187_v61, %v1186_v60  ;;  %v1384_v60 = vld [vmem:[#allocation16 + $0x50] sm:$0xff]  ;;  %v1385_v61 = vld [vmem:[#allocation16 + $0x58] sm:$0xff] }
 0x2cf   :  { %2356 = vmatpush3.bf16.msra.mxu1 %v2355_v8  ;;  %v1275_v8 = vld [vmem:[#allocation14 + $0x28] sm:$0xff] }
 0x2d0   :  { %2392 = vmatpush3.bf16.msra.mxu0 %v2389_v7  ;;  %2358 = vmatprep.subr.bf16.mxu1 %v2357_v55  ;;  %v1274_v7 = vld [vmem:[#allocation14 + $0x20] sm:$0xff]  ;;  %v1276_v55 = vld [vmem:[#allocation14 + $0x30] sm:$0xff] }
 0x2d1   :  { %v2433_v10 = vpack.c.bf16 %v1275_v8, %v1274_v7  ;;  %v2437_v13 = vpack.c.bf16 %v1277_v11, %v1276_v55  ;;  %v1527_v7 = vld [vmem:[%s3172_s14] ss:$0 sm:$0xff] }
 0x2d3   :  { %2360 = vmatpush3.bf16.msra.mxu1 %v2359_v14  ;;  %v1278_v14 = vld [vmem:[#allocation14 + $0x40] sm:$0xff] }
 0x2d4   :  { %2394 = vmatprep.subr.bf16.mxu1 %v2393_v17  ;;  %v2441_v16 = vpack.c.bf16 %v1279_v15, %v1278_v14  ;;  %v1528_v15 = vld [vmem:[%s3174_s16] ss:$0 sm:$0xff] }
 0x386   :  { %v1964_v18 = vpop.f32.mrb[10].mxu0 }
 0x387   :  { %v938_v19 = vpop.f32.mrb[11].mxu0 }
 0x389   :  { %v1691_v48 = vpop.f32.mrb[4].mxu1 }
 0x38a   :  { %v1692_v21 = vpop.f32.mrb[5].mxu1 }
 0x38b   :  { %v1693_v22 = vadd.f32 %v1692_v21, %v1691_v48  ;;  %v1282_v48 = vld [vmem:[#allocation14 + $0x60] sm:$0xff] }
 0x38d   :  { %v864_v23 = vadd.f32 %v1693_v22, %v1516_v20  ;;  %v1694_v24 = vpop.f32.mrb[6].mxu1  ;;  %v1284_v22 = vld [vmem:[#allocation14 + $0x70] sm:$0xff] }
 0x38e   :  { %v1695_v25 = vpop.f32.mrb[7].mxu1 }
 0x38f   :  { %v1696_v26 = vadd.f32 %v1695_v25, %v1694_v24  ;;  %v939_v27 = vadd.f32 %v938_v19, %v864_v23  ;;  %v1285_v23 = vld [vmem:[#allocation14 + $0x78] sm:$0xff]  ;;  %v1374_v25 = vld [vmem:[#allocation16] sm:$0xff] }
 0x390   :  { %v2453_v24 = vpack.c.bf16 %v1285_v23, %v1284_v22 }
 0x391   :  { %v869_v28 = vadd.f32 %v1696_v26, %v1516_v20  ;;  %v947_v30 = vmax.f32 %v939_v27, 0.0  ;;  %v1283_v20 = vld [vmem:[#allocation14 + $0x68] sm:$0xff]  ;;  %v1376_v27 = vld [vmem:[#allocation16 + $0x10] sm:$0xff] }
 0x392   :  { %v2449_v21 = vpack.c.bf16 %v1283_v20, %v1282_v48  ;;  %v1375_v26 = vld [vmem:[#allocation16 + $0x8] sm:$0xff] }
 0x393   :  { %v944_v31 = vadd.f32 %v1964_v18, %v869_v28  ;;  %1997 = vmatprep.mubr.f32.mxu0 %v947_v30  ;;  %v949_v37 = vrot.slane %v947_v30, 4  ;;  %v955_v49 = vrot.slane %v947_v30, 6  ;;  %v1281_v18 = vld [vmem:[#allocation14 + $0x58] sm:$0xff]  ;;  %v2457_v28 = vpack.c.bf16 %v1375_v26, %v1374_v25 }
 0x394   :  { %v1377_v30 = vld [vmem:[#allocation16 + $0x18] sm:$0xff] }
 0x395   :  { %v948_v32 = vmax.f32 %v944_v31, 0.0  ;;  %v2461_v31 = vpack.c.bf16 %v1377_v30, %v1376_v27  ;;  %2458 = vmatprep.subr.bf16.mxu0 %v2457_v28 }
 0x397   :  { %v950_v36 = vrot.slane %v948_v32, 4  ;;  %1998 = vmatmul.mubr.f32.vlgmr.msra.gmra.mrb[12].mxu0 %v948_v32  ;;  %v956_v38 = vrot.slane %v948_v32, 6  ;;  %v1378_v32 = vld [vmem:[#allocation16 + $0x20] sm:$0xff] }
 0x398   :  { %2460 = vmatpush3.bf16.msra.mxu0 %v2457_v28  ;;  %v2465_v34 = vpack.c.bf16 %v1379_v33, %v1378_v32 }
 0x399   :  { %v958_v40 = vsel %vm186_vm2, %v956_v38, %v955_v49  ;;  %v952_v41 = vsel %vm730_vm4, %v950_v36, %v949_v37  ;;  %v957_v42 = vsel %vm186_vm2, %v955_v49, %v956_v38  ;;  %v951_v43 = vsel %vm730_vm4, %v949_v37, %v950_v36  ;;  %2462 = vmatprep.subr.bf16.mxu0 %v2461_v31  ;;  %v1380_v36 = vld [vmem:[#allocation16 + $0x30] sm:$0xff]  ;;  %v1381_v37 = vld [vmem:[#allocation16 + $0x38] sm:$0xff] }
 0x39a   :  { %1523 = vmatprep.mubr.msk.f32.mxu1 %vm3047_vm3, %v958_v40  ;;  %v2469_v49 = vpack.c.bf16 %v1381_v37, %v1380_v36 }
 0x39b   :  { %1525 = vmatmul.mubr.msk.f32.vlgmr.msra.gmra.mrb[8].mxu1 %vm3098_vm5, %v952_v41  ;;  %v1521_v41 = vld [vmem:[%s3168_s10] ss:$0 sm:$0xff] }
 0x39c   :  { %1085 = vmatprep.mubr.f32.mxu1 %v957_v42  ;;  %2396 = vmatpush3.bf16.msra.mxu1 %v2393_v17  ;;  %v1280_v17 = vld [vmem:[#allocation14 + $0x50] sm:$0xff] }
 0x39d   :  { %2398 = vmatprep.subr.bf16.mxu1 %v2397_v39  ;;  %v2445_v19 = vpack.c.bf16 %v1281_v18, %v1280_v17  ;;  %2464 = vmatpush3.bf16.msra.mxu0 %v2461_v31 }
 0x39e   :  { %2466 = vmatprep.subr.bf16.mxu0 %v2465_v34 }
 0x39f   :  { %1086 = vmatmul.mubr.f32.gmra.mrb[10].mxu1 %v951_v43 }
 0x3a0   :  { %2400 = vmatpush3.bf16.msra.mxu1 %v2397_v39  ;;  %2032 = vmatprep.mubr.f32.mxu1 %v2517_v51 }
 0x3a1   :  { %2402 = vmatprep.subr.bf16.mxu1 %v2401_v46  ;;  %2468 = vmatpush3.bf16.msra.mxu0 %v2465_v34 }
 0x3a2   :  { %2470 = vmatprep.subr.bf16.mxu0 %v2469_v49 }
 0x3a4   :  { %2404 = vmatpush3.bf16.msra.mxu1 %v2401_v46 }
 0x3a5   :  { %2406 = vmatprep.subr.bf16.mxu1 %v2405_v35  ;;  %2472 = vmatpush3.bf16.msra.mxu0 %v2469_v49 }
 0x3a8   :  { %2408 = vmatpush3.bf16.msra.mxu1 %v2405_v35 }
 0x3a9   :  { %2410 = vmatprep.subr.bf16.mxu1 %v2409_v53 }
 0x3ac   :  { %2412 = vmatpush3.bf16.msra.mxu1 %v2409_v53 }
 0x3ad   :  { %2414 = vmatprep.subr.bf16.mxu1 %v2413_v56 }
 0x3b0   :  { %2416 = vmatpush3.bf16.msra.mxu1 %v2413_v56 }
 0x3b1   :  { %2418 = vmatprep.subr.bf16.mxu1 %v2417_v59 }
 0x3b4   :  { %2420 = vmatpush3.bf16.msra.mxu1 %v2417_v59  ;;  %v2473_v59 = vpack.c.bf16 %v1383_v58, %v1382_v57 }
 0x3b5   :  { %2422 = vmatprep.subr.bf16.mxu1 %v2421_v62 }
 0x3b6   :  { %2474 = vmatprep.subr.bf16.mxu0 %v2473_v59 }
 0x3b7   :  { %2476 = vmatpush3.bf16.msra.mxu0 %v2473_v59 }
 0x3b8   :  { %2424 = vmatpush3.bf16.msra.mxu1 %v2421_v62  ;;  %v2477_v62 = vpack.c.bf16 %v1385_v61, %v1384_v60 }
 0x3b9   :  { %2426 = vmatprep.subr.bf16.mxu1 %v2425_v3 }
 0x3ba   :  { %2478 = vmatprep.subr.bf16.mxu0 %v2477_v62 }
 0x3bb   :  { %2033 = vmatmul.mubr.f32.vlgmr.msra.gmra.mrb[12].mxu1 %v2518_v9  ;;  %2480 = vmatpush3.bf16.msra.mxu0 %v2477_v62 }
 0x3bc   :  { %2428 = vmatpush3.bf16.msra.mxu1 %v2425_v3  ;;  %v1388_v3 = vld [vmem:[#allocation16 + $0x70] sm:$0xff] }
 0x3bd   :  { %2430 = vmatprep.subr.bf16.mxu1 %v2429_v6  ;;  %v2485_v5 = vpack.c.bf16 %v1389_v4, %v1388_v3 }
 0x3c0   :  { %2432 = vmatpush3.bf16.msra.mxu1 %v2429_v6 }
 0x3c1   :  { %2434 = vmatprep.subr.bf16.mxu1 %v2433_v10 }
 0x3c4   :  { %2436 = vmatpush3.bf16.msra.mxu1 %v2433_v10 }
 0x3c5   :  { %2438 = vmatprep.subr.bf16.mxu1 %v2437_v13 }
 0x3c8   :  { %2440 = vmatpush3.bf16.msra.mxu1 %v2437_v13 }
 0x3c9   :  { %2442 = vmatprep.subr.bf16.mxu1 %v2441_v16 }
 0x3cc   :  { %2444 = vmatpush3.bf16.msra.mxu1 %v2441_v16 }
 0x3cd   :  { %2446 = vmatprep.subr.bf16.mxu1 %v2445_v19 }
 0x3d0   :  { %2448 = vmatpush3.bf16.msra.mxu1 %v2445_v19 }
 0x3d1   :  { %2450 = vmatprep.subr.bf16.mxu1 %v2449_v21 }
 0x3d4   :  { %2452 = vmatpush3.bf16.msra.mxu1 %v2449_v21 }
 0x3d5   :  { %2454 = vmatprep.subr.bf16.mxu1 %v2453_v24 }
 0x3d8   :  { %2456 = vmatpush3.bf16.msra.mxu1 %v2453_v24 }
 0x46a   :  { %v1999_v38 = vpop.f32.mrb[12].mxu0 }
 0x46b   :  { %v1157_v39 = vpop.f32.mrb[13].mxu0 }
 0x46e   :  { %v1747_v40 = vpop.f32.mrb[8].mxu1 }
 0x46f   :  { %v1748_v42 = vpop.f32.mrb[9].mxu1 }
 0x470   :  { %v1749_v43 = vadd.f32 %v1748_v42, %v1747_v40 }
 0x472   :  { %v1083_v44 = vadd.f32 %v1749_v43, %v1521_v41  ;;  %v1750_v45 = vpop.f32.mrb[10].mxu1 }
 0x473   :  { %v1751_v46 = vpop.f32.mrb[11].mxu1 }
 0x474   :  { %v1158_v47 = vadd.f32 %v1157_v39, %v1083_v44  ;;  %v1752_v50 = vadd.f32 %v1751_v46, %v1750_v45 }
 0x476   :  { %v1166_v51 = vmax.f32 %v1158_v47, 0.0  ;;  %v1088_v35 = vadd.f32 %v1752_v50, %v1521_v41 }
 0x478   :  { %v1163_v52 = vadd.f32 %v1999_v38, %v1088_v35  ;;  %v1168_v29 = vadd.f32 %v1166_v51, %v3087_v1  ;;  %v2481_v1 = vpack.c.bf16 %v1387_v2, %v1386_v63 }
 0x47a   :  { %v1167_v53 = vmax.f32 %v1163_v52, 0.0  ;;  %v1170_v54 = vmax.f32 %v1168_v29, 0.0  ;;  %2482 = vmatprep.subr.bf16.mxu0 %v2481_v1 }
 0x47b   :  { %2484 = vmatpush3.bf16.msra.mxu0 %v2481_v1 }
 0x47c   :  { %v1169_v12 = vadd.f32 %v1167_v53, %v3085_v0  ;;  %2067 = vmatprep.mubr.f32.mxu1 %v1170_v54  ;;  %2486 = vmatprep.subr.bf16.mxu0 %v2485_v5  ;;  %v1526_v0 = vld [vmem:[%s3170_s12] ss:$0 sm:$0xff]  ;;  %s2762_s12 = smov [#allocation17]  }
 0x47d   :  { %s1489_s14 = sshll.u32 %s2762_s12, 4  ;;  %s1490_s14 = int_to_ptr.vmem [resolvable:$true] %s1489_s14 }
 0x47e   :  { %v1171_v56 = vmax.f32 %v1169_v12, 0.0  ;;  %s2717_s16 = scalar_lea.vmem %s1490_s14, 256  ;;  %p2722_p3 = scmp.lt.s32.totalorder %s1490_s14, %s1490_s14 }
 0x47f   :  { %2488 = vmatpush3.bf16.msra.mxu0 %v2485_v5  ;;  %p2718_p2 = scmp.ne.s32.totalorder %s1490_s14, %s2717_s16  ;;  %p2723_p4 = scmp.lt.s32.totalorder %s2717_s16, %s2717_s16 }
 0x480   :  { %2068 = vmatmul.mubr.f32.vlgmr.msra.gmra.mrb[12].mxu1 %v1171_v56 }
 0x481   :  { %p2724_p5 = por %p2723_p4, %p2722_p3 }
 0x483   :  { %p2725_p6 = pnand %p2724_p5, %p2718_p2 }
 0x553   :  { %v2069_v6 = vpop.f32.mrb[12].mxu1 }
 0x554   :  { %v2489_v8 = vadd.f32 %v2069_v6, %v1526_v0  ;;  %v1352_v9 = vpop.f32.mrb[13].mxu1 }
 0x555   :  { %v2490_v10 = vadd.f32 %v1526_v0, %v1352_v9 }
 0x556   :  { %v1371_v55 = vadd.f32 %v2489_v8, %v1527_v7 }
 0x557   :  { %v1370_v11 = vadd.f32 %v2490_v10, %v1527_v7 }
 0x559   :  { %2505 = vtanh.f32 %v1370_v11 }
 0x55a   :  { %2507 = vtanh.f32 %v1371_v55 }
 0x563   :  { %v2506_v13 = vpop.eup %2505 }
 0x564   :  { %v2508_v14 = vpop.eup %2507  ;;  %2102 = vmatprep.mubr.f32.mxu0 %v2506_v13 }
 0x565   :  { %2103 = vmatmul.mubr.f32.vlgmr.msra.gmra.mrb[14].mxu0 %v2508_v14 }
 0x638   :  { %v2104_v16 = vpop.f32.mrb[14].mxu0 }
 0x639   :  { %v1469_v17 = vadd.f32 %v2104_v16, %v1528_v15  ;;  %v1463_v18 = vpop.f32.mrb[15].mxu0 }
 0x63a   :  { %v1464_v19 = vadd.f32 %v1528_v15, %v1463_v18 }
 0x63b   :  { %v1473_v48 = vsub.f32 0.0, %v1469_v17 }
 0x63c   :  { %v1472_v20 = vsub.f32 0.0, %v1464_v19 }
 0x63d   :  { %v1476_v21 = vmul.f32 1.442695, %v1473_v48 }
 0x63e   :  { %v1474_v22 = vmul.f32 1.442695, %v1472_v20 }
 0x63f   :  { %2509 = vpow2.f32 %v1476_v21 }
 0x640   :  { %2511 = vpow2.f32 %v1474_v22 }
 0x649   :  { %v2510_v23 = vpop.eup %2509 }
 0x64a   :  { %v2512_v24 = vpop.eup %2511  ;;  %v1479_v25 = vadd.f32 1.0, %v2510_v23 }
 0x64b   :  { %v1478_v26 = vadd.f32 1.0, %v2512_v24 }
 0x64c   :  { %2513 = vrcp.f32 %v1479_v25 }
 0x64d   :  { %2515 = vrcp.f32 %v1478_v26 }
 0x656   :  { %v2514_v27 = vpop.eup %2513 }
 0x657   :  { %v2516_v28 = vpop.eup %2515  ;;  %1483 = vst [vmem:[#allocation17 + $0x8] sm:$0xff] %v2514_v27 }
 0x658   :  { %1482 = vst [vmem:[#allocation17] sm:$0xff] %v2516_v28 }
 0x659   :  { %2728 = shalt.err (!%p2725_p6)
}
 0x65a   :  { %s3190_s25 = sld [smem:[#allocation26_spill]] }
 0x660   :  { %s2729_s3 = scalar_lea.hbm %s3190_s25, 256 }
 0x661   :  { %p2730_p7 = scmp.ne.s32.totalorder %s3190_s25, %s2729_s3  ;;  %p2733_p8 = scmp.lt.u32.totalorder %s2729_s3, %s3190_s25 }
 0x663   :  { %p2735_p9 = pnand %p2733_p8, %p2730_p7 }
 0x665   :  { %2738 = shalt.err (!%p2735_p9)
}
 0x666   :  { %1495 = dma.vmem_to_hbm [thread:$0]  %s1490_s14, 256, %s3190_s25, [#allocation4], %s2753_s22, %s2753_s22, %s2754_s23  }
 0x667   :  { %2749 = dma.done.wait [#allocation4], 256  }
 0x668   :  { %2750 = vsyncadd [#allocation4], 4294967040 }
 0x669   :  { %1499 = vsyncpa [#allocation3], 1 }
 0x66a   :  { %1500 = vsyncpa [#allocation6], 1 }
 0x66b   :  { %1501 = vsyncpa [#allocation9], 1 }
 0x66c   :  { %1502 = vsyncpa [#allocation12], 1 }
 0x66d   :  { %1503 = vsyncpa [#allocation15], 1 }
 0x66e   :  { %1504 = vsyncpa [#allocation4], 1 }

</bundles_post_ra>
